<compile_context>
chip_gen: v5e
topology: v5e:2x2
jax: 0.10.0
libtpu: 0.0.40
codegen_flags: <defaults>
</compile_context>

<pallas_src>
import functools
import math

import jax
import jax.numpy as jnp
from jax.experimental import pallas as pl
from jax.experimental.pallas import tpu as pltpu

INPUT_SIZE = 28
HIDDEN_SIZE = 32          # small stand-in for 256 in the torch module
NUM_CLASSES = 10
NUM_LAYERS = 2
BATCH = 2
SEQ_LEN = 8


# ---------------------------------------------------------------------------
# Fused Pallas kernel: 2 bidirectional LSTM layers + FC in a single invocation
# ---------------------------------------------------------------------------
def _bilstm_layer(x_flat, w_ih, w_hh, bias, *, T, B, H):
    """One bidirectional LSTM layer on VMEM-resident values.

    x_flat: (T*B, D_in) time-major flattened input.
    w_ih:   (D_in, 8H)  [fwd i,f,g,o | bwd i,f,g,o] input->gate weights.
    w_hh:   (H, 8H)     [fwd | bwd] hidden->gate weights.
    bias:   (1, 8H)     b_ih + b_hh for both directions.
    Returns (T*B, 2H) time-major flattened [fwd | bwd] hidden sequence.
    """
    G = 4 * H
    # Input projection hoisted out of the recurrence: one MXU matmul covering
    # every timestep and both directions (bias folded in here, once).
    xg = jnp.dot(x_flat, w_ih, preferred_element_type=jnp.float32) + bias  # (T*B, 8H)

    h_f = jnp.zeros((B, H), jnp.float32)
    c_f = jnp.zeros((B, H), jnp.float32)
    h_b = jnp.zeros((B, H), jnp.float32)
    c_b = jnp.zeros((B, H), jnp.float32)
    fwd_out = [None] * T
    bwd_out = [None] * T

    # Fully unrolled static time loop (T small): no per-step grid/pipeline
    # overhead, LLO scheduler sees the whole recurrence.
    for t in range(T):
        tb = T - 1 - t                                   # time index for bwd dir
        xg_f = xg[t * B:(t + 1) * B, :G]                 # (B, 4H) fwd gates @ t
        xg_b = xg[tb * B:(tb + 1) * B, G:]               # (B, 4H) bwd gates @ tb
        # Pack both directions' hidden states into the M dimension so the
        # recurrent projection is a single MXU push per step.
        h_both = jnp.concatenate([h_f, h_b], axis=0)                         # (2B, H)
        rec = jnp.dot(h_both, w_hh, preferred_element_type=jnp.float32)      # (2B, 8H)
        gates = (jnp.concatenate([xg_f, xg_b], axis=0)
                 + jnp.concatenate([rec[:B, :G], rec[B:, G:]], axis=0))      # (2B, 4H)
        # NOTE: at this toy H=32 the gate slices land on 32-lane boundaries
        # (XLU selects); at the production H=256 they are 256-lane aligned.
        i_g = jax.nn.sigmoid(gates[:, 0 * H:1 * H])
        f_g = jax.nn.sigmoid(gates[:, 1 * H:2 * H])
        g_g = jnp.tanh(gates[:, 2 * H:3 * H])
        o_g = jax.nn.sigmoid(gates[:, 3 * H:4 * H])
        c_both = jnp.concatenate([c_f, c_b], axis=0)     # (2B, H)
        c_new = f_g * c_both + i_g * g_g
        h_new = o_g * jnp.tanh(c_new)
        h_f, h_b = h_new[:B], h_new[B:]
        c_f, c_b = c_new[:B], c_new[B:]
        fwd_out[t] = h_f
        bwd_out[tb] = h_b

    # Assemble the full bidirectional sequence once (single bulk value, one
    # write path) instead of per-step masked stores.
    rows = [jnp.concatenate([fwd_out[s], bwd_out[s]], axis=-1) for s in range(T)]
    return jnp.concatenate(rows, axis=0)                 # (T*B, 2H)


def blstm_fused_kernel(x_ref, w_ih1_ref, w_hh1_ref, b1_ref,
                       w_ih2_ref, w_hh2_ref, b2_ref,
                       w_fc_ref, b_fc_ref, out_ref, *, T, B, H):
    # TODO(synk): at production sizes (H=256) cast weights/activations to bf16
    # for the MXU matmuls (v6e/v7x) and run the two directions on v7x's two
    # TensorCores via a core-parallel grid axis; kept f32/single-core here for
    # a tight toy-size numerical check.
    seq1 = _bilstm_layer(x_ref[...], w_ih1_ref[...], w_hh1_ref[...], b1_ref[...],
                         T=T, B=B, H=H)                  # (T*B, 2H)
    seq2 = _bilstm_layer(seq1, w_ih2_ref[...], w_hh2_ref[...], b2_ref[...],
                         T=T, B=B, H=H)                  # (T*B, 2H)
    last = seq2[(T - 1) * B:T * B, :]                    # == torch out[:, -1, :]
    out_ref[...] = (jnp.dot(last, w_fc_ref[...],
                            preferred_element_type=jnp.float32) + b_fc_ref[...])


# ---------------------------------------------------------------------------
# Wrappers
# ---------------------------------------------------------------------------
def prepare_params(params, hidden_size):
    """One-time packing: transposes, direction concat, bias sums (not per call)."""
    H = hidden_size
    layers = []
    for (wif, whf, bif, bhf), (wib, whb, bib, bhb) in params["lstm"]:
        w_ih = jnp.concatenate([wif.T, wib.T], axis=1)        # (D_in, 8H)
        w_hh = jnp.concatenate([whf.T, whb.T], axis=1)        # (H, 8H)
        b = jnp.concatenate([bif + bhf, bib + bhb]).reshape(1, 8 * H)
        layers.append((w_ih, w_hh, b))
    w_fc, b_fc = params["fc"]
    return {"layers": layers,
            "fc_w": jnp.transpose(w_fc),                      # (2H, C)
            "fc_b": b_fc.reshape(1, -1)}                      # (1, C)


def blstm_forward(x_btd, prep, hidden_size, num_classes):
    """Equivalent of BLSTM.forward: x_btd is (B, T, input_size) -> (B, C)."""
    B, T, D = x_btd.shape
    H = hidden_size
    C = num_classes
    # Time-major flat layout (row t*B+b == x[b, t]); done once in XLA.
    x_flat = jnp.transpose(x_btd, (1, 0, 2)).reshape(T * B, D).astype(jnp.float32)
    (w_ih1, w_hh1, b1), (w_ih2, w_hh2, b2) = prep["layers"]
    w_fc, b_fc = prep["fc_w"], prep["fc_b"]
    args = (x_flat, w_ih1, w_hh1, b1, w_ih2, w_hh2, b2, w_fc, b_fc)

    kernel = functools.partial(blstm_fused_kernel, T=T, B=B, H=H)
    return pl.pallas_call(
        kernel,
        out_shape=jax.ShapeDtypeStruct((B, C), jnp.float32),
        grid_spec=pltpu.PrefetchScalarGridSpec(
            num_scalar_prefetch=0,
            grid=(1,),                                     # single fused step
            in_specs=[pl.BlockSpec(a.shape, lambda i: (0, 0)) for a in args],
            out_specs=pl.BlockSpec((B, C), lambda i: (0, 0)),
        ),
        compiler_params=pltpu.CompilerParams(
            dimension_semantics=("arbitrary",)),
    )(*args)


# ---------------------------------------------------------------------------
# Deterministic parameter init (PyTorch nn.LSTM / nn.Linear shapes)
# ---------------------------------------------------------------------------
def init_params(key, input_size, hidden_size, num_layers, num_classes):
    k = 1.0 / math.sqrt(hidden_size)
    params = {"lstm": []}
    for layer in range(num_layers):
        in_size = input_size if layer == 0 else 2 * hidden_size
        dirs = []
        for _direction in range(2):
            key, k1, k2, k3, k4 = jax.random.split(key, 5)
            w_ih = jax.random.uniform(k1, (4 * hidden_size, in_size), jnp.float32, -k, k)
            w_hh = jax.random.uniform(k2, (4 * hidden_size, hidden_size), jnp.float32, -k, k)
            b_ih = jax.random.uniform(k3, (4 * hidden_size,), jnp.float32, -k, k)
            b_hh = jax.random.uniform(k4, (4 * hidden_size,), jnp.float32, -k, k)
            dirs.append((w_ih, w_hh, b_ih, b_hh))
        params["lstm"].append(tuple(dirs))
    kf = 1.0 / math.sqrt(2 * hidden_size)
    key, k1, k2 = jax.random.split(key, 3)
    w_fc = jax.random.uniform(k1, (num_classes, 2 * hidden_size), jnp.float32, -kf, kf)
    b_fc = jax.random.uniform(k2, (num_classes,), jnp.float32, -kf, kf)
    params["fc"] = (w_fc, b_fc)
    return params


# ---------------------------------------------------------------------------
# Pure-JAX reference (mirrors PyTorch LSTM semantics) for validation
# ---------------------------------------------------------------------------
def _cell_ref(x_t, h, c, w_ih, w_hh, b_ih, b_hh, H):
    gates = x_t @ w_ih.T + h @ w_hh.T + b_ih + b_hh
    i = jax.nn.sigmoid(gates[:, :H])
    f = jax.nn.sigmoid(gates[:, H:2 * H])
    g = jnp.tanh(gates[:, 2 * H:3 * H])
    o = jax.nn.sigmoid(gates[:, 3 * H:])
    c = f * c + i * g
    h = o * jnp.tanh(c)
    return h, c


def blstm_ref(x_btd, params, H, L):
    B, T, _ = x_btd.shape
    x = x_btd.astype(jnp.float32)
    for layer in range(L):
        (wif, whf, bif, bhf), (wib, whb, bib, bhb) = params["lstm"][layer]
        hf = jnp.zeros((B, H)); cf = jnp.zeros((B, H))
        hb = jnp.zeros((B, H)); cb = jnp.zeros((B, H))
        fwd, bwd = [], []
        for t in range(T):
            hf, cf = _cell_ref(x[:, t], hf, cf, wif, whf, bif, bhf, H)
            fwd.append(hf)
        for t in range(T - 1, -1, -1):
            hb, cb = _cell_ref(x[:, t], hb, cb, wib, whb, bib, bhb, H)
            bwd.append(hb)
        bwd = bwd[::-1]
        x = jnp.concatenate([jnp.stack(fwd, 1), jnp.stack(bwd, 1)], axis=-1)
    w_fc, b_fc = params["fc"]
    return x[:, -1, :] @ w_fc.T + b_fc


if __name__ == "__main__":
    key = jax.random.PRNGKey(0)
    key, pkey, xkey = jax.random.split(key, 3)
    params = init_params(pkey, INPUT_SIZE, HIDDEN_SIZE, NUM_LAYERS, NUM_CLASSES)
    prep = prepare_params(params, HIDDEN_SIZE)
    x = jax.random.normal(xkey, (BATCH, SEQ_LEN, INPUT_SIZE), jnp.float32)

    out = blstm_forward(x, prep, HIDDEN_SIZE, NUM_CLASSES)
    out = jax.block_until_ready(out)
    assert out.shape == (BATCH, NUM_CLASSES), out.shape

    ref = jax.block_until_ready(blstm_ref(x, params, HIDDEN_SIZE, NUM_LAYERS))
    assert jnp.allclose(out, ref, atol=2e-3, rtol=2e-3), (out, ref)

    print("KERNEL_OK")
</pallas_src>

<mosaic_0001>
module attributes {stable_mosaic.version = 11 : i64} {
  func.func @blstm_fused_kernel(%arg0: i32, %arg1: memref<16x28xf32, #tpu.memory_space<vmem>>, %arg2: memref<28x256xf32, #tpu.memory_space<vmem>>, %arg3: memref<32x256xf32, #tpu.memory_space<vmem>>, %arg4: memref<1x256xf32, #tpu.memory_space<vmem>>, %arg5: memref<64x256xf32, #tpu.memory_space<vmem>>, %arg6: memref<32x256xf32, #tpu.memory_space<vmem>>, %arg7: memref<1x256xf32, #tpu.memory_space<vmem>>, %arg8: memref<64x10xf32, #tpu.memory_space<vmem>>, %arg9: memref<1x10xf32, #tpu.memory_space<vmem>>, %arg10: memref<2x10xf32, #tpu.memory_space<vmem>>) attributes {dimension_semantics = [#tpu.dimension_semantics<arbitrary>], iteration_bounds = array<i64: 1>, scalar_prefetch = 0 : i64, scratch_operands = 0 : i64, tpu.core_type = #tpu.core_type<tc>, window_params = [{pipeline_mode = #tpu.pipeline_mode<synchronous>, transform_indices = @transform_0, window_bounds = array<i64: 16, 28>}, {pipeline_mode = #tpu.pipeline_mode<synchronous>, transform_indices = @transform_1, window_bounds = array<i64: 28, 256>}, {pipeline_mode = #tpu.pipeline_mode<synchronous>, transform_indices = @transform_2, window_bounds = array<i64: 32, 256>}, {pipeline_mode = #tpu.pipeline_mode<synchronous>, transform_indices = @transform_3, window_bounds = array<i64: 1, 256>}, {pipeline_mode = #tpu.pipeline_mode<synchronous>, transform_indices = @transform_4, window_bounds = array<i64: 64, 256>}, {pipeline_mode = #tpu.pipeline_mode<synchronous>, transform_indices = @transform_5, window_bounds = array<i64: 32, 256>}, {pipeline_mode = #tpu.pipeline_mode<synchronous>, transform_indices = @transform_6, window_bounds = array<i64: 1, 256>}, {pipeline_mode = #tpu.pipeline_mode<synchronous>, transform_indices = @transform_7, window_bounds = array<i64: 64, 10>}, {pipeline_mode = #tpu.pipeline_mode<synchronous>, transform_indices = @transform_8, window_bounds = array<i64: 1, 10>}, {pipeline_mode = #tpu.pipeline_mode<synchronous>, transform_indices = @transform_9, window_bounds = array<i64: 2, 10>}]} {
    %c0 = arith.constant 0 : index
    %c0_0 = arith.constant 0 : index
    %0 = vector.load %arg1[%c0, %c0_0] : memref<16x28xf32, #tpu.memory_space<vmem>>, vector<16x28xf32>
    %c0_1 = arith.constant 0 : index
    %c0_2 = arith.constant 0 : index
    %1 = vector.load %arg2[%c0_1, %c0_2] : memref<28x256xf32, #tpu.memory_space<vmem>>, vector<28x256xf32>
    %c0_3 = arith.constant 0 : index
    %c0_4 = arith.constant 0 : index
    %2 = vector.load %arg3[%c0_3, %c0_4] : memref<32x256xf32, #tpu.memory_space<vmem>>, vector<32x256xf32>
    %c0_5 = arith.constant 0 : index
    %c0_6 = arith.constant 0 : index
    %3 = vector.load %arg4[%c0_5, %c0_6] : memref<1x256xf32, #tpu.memory_space<vmem>>, vector<1x256xf32>
    %cst = arith.constant dense<0.000000e+00> : vector<16x256xf32>
    %4 = tpu.matmul %0, %1, %cst {dimension_numbers = #tpu.dot_dimension_numbers<[1], [0], [0], [1], [0, 0, 1, 1], [], []>} : vector<16x28xf32>, vector<28x256xf32>, vector<16x256xf32> -> vector<16x256xf32>
    %5 = vector.broadcast %3 : vector<1x256xf32> to vector<16x256xf32>
    %6 = arith.addf %4, %5 : vector<16x256xf32>
    %cst_7 = arith.constant 0.000000e+00 : f32
    %7 = vector.broadcast %cst_7 : f32 to vector<2x32xf32>
    %cst_8 = arith.constant 0.000000e+00 : f32
    %8 = vector.broadcast %cst_8 : f32 to vector<2x32xf32>
    %cst_9 = arith.constant 0.000000e+00 : f32
    %9 = vector.broadcast %cst_9 : f32 to vector<2x32xf32>
    %cst_10 = arith.constant 0.000000e+00 : f32
    %10 = vector.broadcast %cst_10 : f32 to vector<2x32xf32>
    %11 = vector.extract_strided_slice %6 {offsets = [0, 0], sizes = [2, 128], strides = [1, 1]} : vector<16x256xf32> to vector<2x128xf32>
    %12 = vector.extract_strided_slice %6 {offsets = [14, 128], sizes = [2, 128], strides = [1, 1]} : vector<16x256xf32> to vector<2x128xf32>
    %13 = tpu.concatenate %7, %9 in 0 : vector<2x32xf32>, vector<2x32xf32> -> vector<4x32xf32>
    %cst_11 = arith.constant dense<0.000000e+00> : vector<4x256xf32>
    %14 = tpu.matmul %13, %2, %cst_11 {dimension_numbers = #tpu.dot_dimension_numbers<[1], [0], [0], [1], [0, 0, 1, 1], [], []>} : vector<4x32xf32>, vector<32x256xf32>, vector<4x256xf32> -> vector<4x256xf32>
    %15 = tpu.concatenate %11, %12 in 0 : vector<2x128xf32>, vector<2x128xf32> -> vector<4x128xf32>
    %16 = vector.extract_strided_slice %14 {offsets = [0, 0], sizes = [2, 128], strides = [1, 1]} : vector<4x256xf32> to vector<2x128xf32>
    %17 = vector.extract_strided_slice %14 {offsets = [2, 128], sizes = [2, 128], strides = [1, 1]} : vector<4x256xf32> to vector<2x128xf32>
    %18 = tpu.concatenate %16, %17 in 0 : vector<2x128xf32>, vector<2x128xf32> -> vector<4x128xf32>
    %19 = arith.addf %15, %18 : vector<4x128xf32>
    %20 = vector.extract_strided_slice %19 {offsets = [0, 0], sizes = [4, 32], strides = [1, 1]} : vector<4x128xf32> to vector<4x32xf32>
    %21 = arith.negf %20 : vector<4x32xf32>
    %22 = math.exp %21 : vector<4x32xf32>
    %cst_12 = arith.constant 1.000000e+00 : f32
    %23 = vector.broadcast %cst_12 : f32 to vector<4x32xf32>
    %24 = arith.addf %23, %22 : vector<4x32xf32>
    %25 = arith.divf %23, %24 : vector<4x32xf32>
    %26 = vector.extract_strided_slice %19 {offsets = [0, 32], sizes = [4, 32], strides = [1, 1]} : vector<4x128xf32> to vector<4x32xf32>
    %27 = arith.negf %26 : vector<4x32xf32>
    %28 = math.exp %27 : vector<4x32xf32>
    %cst_13 = arith.constant 1.000000e+00 : f32
    %29 = vector.broadcast %cst_13 : f32 to vector<4x32xf32>
    %30 = arith.addf %29, %28 : vector<4x32xf32>
    %31 = arith.divf %29, %30 : vector<4x32xf32>
    %32 = vector.extract_strided_slice %19 {offsets = [0, 64], sizes = [4, 32], strides = [1, 1]} : vector<4x128xf32> to vector<4x32xf32>
    %33 = math.tanh %32 : vector<4x32xf32>
    %34 = vector.extract_strided_slice %19 {offsets = [0, 96], sizes = [4, 32], strides = [1, 1]} : vector<4x128xf32> to vector<4x32xf32>
    %35 = arith.negf %34 : vector<4x32xf32>
    %36 = math.exp %35 : vector<4x32xf32>
    %cst_14 = arith.constant 1.000000e+00 : f32
    %37 = vector.broadcast %cst_14 : f32 to vector<4x32xf32>
    %38 = arith.addf %37, %36 : vector<4x32xf32>
    %39 = arith.divf %37, %38 : vector<4x32xf32>
    %40 = tpu.concatenate %8, %10 in 0 : vector<2x32xf32>, vector<2x32xf32> -> vector<4x32xf32>
    %41 = arith.mulf %31, %40 : vector<4x32xf32>
    %42 = arith.mulf %25, %33 : vector<4x32xf32>
    %43 = arith.addf %41, %42 : vector<4x32xf32>
    %44 = math.tanh %43 : vector<4x32xf32>
    %45 = arith.mulf %39, %44 : vector<4x32xf32>
    %46 = vector.extract_strided_slice %45 {offsets = [0, 0], sizes = [2, 32], strides = [1, 1]} : vector<4x32xf32> to vector<2x32xf32>
    %47 = vector.extract_strided_slice %45 {offsets = [2, 0], sizes = [2, 32], strides = [1, 1]} : vector<4x32xf32> to vector<2x32xf32>
    %48 = vector.extract_strided_slice %43 {offsets = [0, 0], sizes = [2, 32], strides = [1, 1]} : vector<4x32xf32> to vector<2x32xf32>
    %49 = vector.extract_strided_slice %43 {offsets = [2, 0], sizes = [2, 32], strides = [1, 1]} : vector<4x32xf32> to vector<2x32xf32>
    %50 = vector.extract_strided_slice %6 {offsets = [2, 0], sizes = [2, 128], strides = [1, 1]} : vector<16x256xf32> to vector<2x128xf32>
    %51 = vector.extract_strided_slice %6 {offsets = [12, 128], sizes = [2, 128], strides = [1, 1]} : vector<16x256xf32> to vector<2x128xf32>
    %52 = tpu.concatenate %46, %47 in 0 : vector<2x32xf32>, vector<2x32xf32> -> vector<4x32xf32>
    %cst_15 = arith.constant dense<0.000000e+00> : vector<4x256xf32>
    %53 = tpu.matmul %52, %2, %cst_15 {dimension_numbers = #tpu.dot_dimension_numbers<[1], [0], [0], [1], [0, 0, 1, 1], [], []>} : vector<4x32xf32>, vector<32x256xf32>, vector<4x256xf32> -> vector<4x256xf32>
    %54 = tpu.concatenate %50, %51 in 0 : vector<2x128xf32>, vector<2x128xf32> -> vector<4x128xf32>
    %55 = vector.extract_strided_slice %53 {offsets = [0, 0], sizes = [2, 128], strides = [1, 1]} : vector<4x256xf32> to vector<2x128xf32>
    %56 = vector.extract_strided_slice %53 {offsets = [2, 128], sizes = [2, 128], strides = [1, 1]} : vector<4x256xf32> to vector<2x128xf32>
    %57 = tpu.concatenate %55, %56 in 0 : vector<2x128xf32>, vector<2x128xf32> -> vector<4x128xf32>
    %58 = arith.addf %54, %57 : vector<4x128xf32>
    %59 = vector.extract_strided_slice %58 {offsets = [0, 0], sizes = [4, 32], strides = [1, 1]} : vector<4x128xf32> to vector<4x32xf32>
    %60 = arith.negf %59 : vector<4x32xf32>
    %61 = math.exp %60 : vector<4x32xf32>
    %cst_16 = arith.constant 1.000000e+00 : f32
    %62 = vector.broadcast %cst_16 : f32 to vector<4x32xf32>
    %63 = arith.addf %62, %61 : vector<4x32xf32>
    %64 = arith.divf %62, %63 : vector<4x32xf32>
    %65 = vector.extract_strided_slice %58 {offsets = [0, 32], sizes = [4, 32], strides = [1, 1]} : vector<4x128xf32> to vector<4x32xf32>
    %66 = arith.negf %65 : vector<4x32xf32>
    %67 = math.exp %66 : vector<4x32xf32>
    %cst_17 = arith.constant 1.000000e+00 : f32
    %68 = vector.broadcast %cst_17 : f32 to vector<4x32xf32>
    %69 = arith.addf %68, %67 : vector<4x32xf32>
    %70 = arith.divf %68, %69 : vector<4x32xf32>
    %71 = vector.extract_strided_slice %58 {offsets = [0, 64], sizes = [4, 32], strides = [1, 1]} : vector<4x128xf32> to vector<4x32xf32>
    %72 = math.tanh %71 : vector<4x32xf32>
    %73 = vector.extract_strided_slice %58 {offsets = [0, 96], sizes = [4, 32], strides = [1, 1]} : vector<4x128xf32> to vector<4x32xf32>
    %74 = arith.negf %73 : vector<4x32xf32>
    %75 = math.exp %74 : vector<4x32xf32>
    %cst_18 = arith.constant 1.000000e+00 : f32
    %76 = vector.broadcast %cst_18 : f32 to vector<4x32xf32>
    %77 = arith.addf %76, %75 : vector<4x32xf32>
    %78 = arith.divf %76, %77 : vector<4x32xf32>
    %79 = tpu.concatenate %48, %49 in 0 : vector<2x32xf32>, vector<2x32xf32> -> vector<4x32xf32>
    %80 = arith.mulf %70, %79 : vector<4x32xf32>
    %81 = arith.mulf %64, %72 : vector<4x32xf32>
    %82 = arith.addf %80, %81 : vector<4x32xf32>
    %83 = math.tanh %82 : vector<4x32xf32>
    %84 = arith.mulf %78, %83 : vector<4x32xf32>
    %85 = vector.extract_strided_slice %84 {offsets = [0, 0], sizes = [2, 32], strides = [1, 1]} : vector<4x32xf32> to vector<2x32xf32>
    %86 = vector.extract_strided_slice %84 {offsets = [2, 0], sizes = [2, 32], strides = [1, 1]} : vector<4x32xf32> to vector<2x32xf32>
    %87 = vector.extract_strided_slice %82 {offsets = [0, 0], sizes = [2, 32], strides = [1, 1]} : vector<4x32xf32> to vector<2x32xf32>
    %88 = vector.extract_strided_slice %82 {offsets = [2, 0], sizes = [2, 32], strides = [1, 1]} : vector<4x32xf32> to vector<2x32xf32>
    %89 = vector.extract_strided_slice %6 {offsets = [4, 0], sizes = [2, 128], strides = [1, 1]} : vector<16x256xf32> to vector<2x128xf32>
    %90 = vector.extract_strided_slice %6 {offsets = [10, 128], sizes = [2, 128], strides = [1, 1]} : vector<16x256xf32> to vector<2x128xf32>
    %91 = tpu.concatenate %85, %86 in 0 : vector<2x32xf32>, vector<2x32xf32> -> vector<4x32xf32>
    %cst_19 = arith.constant dense<0.000000e+00> : vector<4x256xf32>
    %92 = tpu.matmul %91, %2, %cst_19 {dimension_numbers = #tpu.dot_dimension_numbers<[1], [0], [0], [1], [0, 0, 1, 1], [], []>} : vector<4x32xf32>, vector<32x256xf32>, vector<4x256xf32> -> vector<4x256xf32>
    %93 = tpu.concatenate %89, %90 in 0 : vector<2x128xf32>, vector<2x128xf32> -> vector<4x128xf32>
    %94 = vector.extract_strided_slice %92 {offsets = [0, 0], sizes = [2, 128], strides = [1, 1]} : vector<4x256xf32> to vector<2x128xf32>
    %95 = vector.extract_strided_slice %92 {offsets = [2, 128], sizes = [2, 128], strides = [1, 1]} : vector<4x256xf32> to vector<2x128xf32>
    %96 = tpu.concatenate %94, %95 in 0 : vector<2x128xf32>, vector<2x128xf32> -> vector<4x128xf32>
    %97 = arith.addf %93, %96 : vector<4x128xf32>
    %98 = vector.extract_strided_slice %97 {offsets = [0, 0], sizes = [4, 32], strides = [1, 1]} : vector<4x128xf32> to vector<4x32xf32>
    %99 = arith.negf %98 : vector<4x32xf32>
    %100 = math.exp %99 : vector<4x32xf32>
    %cst_20 = arith.constant 1.000000e+00 : f32
    %101 = vector.broadcast %cst_20 : f32 to vector<4x32xf32>
    %102 = arith.addf %101, %100 : vector<4x32xf32>
    %103 = arith.divf %101, %102 : vector<4x32xf32>
    %104 = vector.extract_strided_slice %97 {offsets = [0, 32], sizes = [4, 32], strides = [1, 1]} : vector<4x128xf32> to vector<4x32xf32>
    %105 = arith.negf %104 : vector<4x32xf32>
    %106 = math.exp %105 : vector<4x32xf32>
    %cst_21 = arith.constant 1.000000e+00 : f32
    %107 = vector.broadcast %cst_21 : f32 to vector<4x32xf32>
    %108 = arith.addf %107, %106 : vector<4x32xf32>
    %109 = arith.divf %107, %108 : vector<4x32xf32>
    %110 = vector.extract_strided_slice %97 {offsets = [0, 64], sizes = [4, 32], strides = [1, 1]} : vector<4x128xf32> to vector<4x32xf32>
    %111 = math.tanh %110 : vector<4x32xf32>
    %112 = vector.extract_strided_slice %97 {offsets = [0, 96], sizes = [4, 32], strides = [1, 1]} : vector<4x128xf32> to vector<4x32xf32>
    %113 = arith.negf %112 : vector<4x32xf32>
    %114 = math.exp %113 : vector<4x32xf32>
    %cst_22 = arith.constant 1.000000e+00 : f32
    %115 = vector.broadcast %cst_22 : f32 to vector<4x32xf32>
    %116 = arith.addf %115, %114 : vector<4x32xf32>
    %117 = arith.divf %115, %116 : vector<4x32xf32>
    %118 = tpu.concatenate %87, %88 in 0 : vector<2x32xf32>, vector<2x32xf32> -> vector<4x32xf32>
    %119 = arith.mulf %109, %118 : vector<4x32xf32>
    %120 = arith.mulf %103, %111 : vector<4x32xf32>
    %121 = arith.addf %119, %120 : vector<4x32xf32>
    %122 = math.tanh %121 : vector<4x32xf32>
    %123 = arith.mulf %117, %122 : vector<4x32xf32>
    %124 = vector.extract_strided_slice %123 {offsets = [0, 0], sizes = [2, 32], strides = [1, 1]} : vector<4x32xf32> to vector<2x32xf32>
    %125 = vector.extract_strided_slice %123 {offsets = [2, 0], sizes = [2, 32], strides = [1, 1]} : vector<4x32xf32> to vector<2x32xf32>
    %126 = vector.extract_strided_slice %121 {offsets = [0, 0], sizes = [2, 32], strides = [1, 1]} : vector<4x32xf32> to vector<2x32xf32>
    %127 = vector.extract_strided_slice %121 {offsets = [2, 0], sizes = [2, 32], strides = [1, 1]} : vector<4x32xf32> to vector<2x32xf32>
    %128 = vector.extract_strided_slice %6 {offsets = [6, 0], sizes = [2, 128], strides = [1, 1]} : vector<16x256xf32> to vector<2x128xf32>
    %129 = vector.extract_strided_slice %6 {offsets = [8, 128], sizes = [2, 128], strides = [1, 1]} : vector<16x256xf32> to vector<2x128xf32>
    %130 = tpu.concatenate %124, %125 in 0 : vector<2x32xf32>, vector<2x32xf32> -> vector<4x32xf32>
    %cst_23 = arith.constant dense<0.000000e+00> : vector<4x256xf32>
    %131 = tpu.matmul %130, %2, %cst_23 {dimension_numbers = #tpu.dot_dimension_numbers<[1], [0], [0], [1], [0, 0, 1, 1], [], []>} : vector<4x32xf32>, vector<32x256xf32>, vector<4x256xf32> -> vector<4x256xf32>
    %132 = tpu.concatenate %128, %129 in 0 : vector<2x128xf32>, vector<2x128xf32> -> vector<4x128xf32>
    %133 = vector.extract_strided_slice %131 {offsets = [0, 0], sizes = [2, 128], strides = [1, 1]} : vector<4x256xf32> to vector<2x128xf32>
    %134 = vector.extract_strided_slice %131 {offsets = [2, 128], sizes = [2, 128], strides = [1, 1]} : vector<4x256xf32> to vector<2x128xf32>
    %135 = tpu.concatenate %133, %134 in 0 : vector<2x128xf32>, vector<2x128xf32> -> vector<4x128xf32>
    %136 = arith.addf %132, %135 : vector<4x128xf32>
    %137 = vector.extract_strided_slice %136 {offsets = [0, 0], sizes = [4, 32], strides = [1, 1]} : vector<4x128xf32> to vector<4x32xf32>
    %138 = arith.negf %137 : vector<4x32xf32>
    %139 = math.exp %138 : vector<4x32xf32>
    %cst_24 = arith.constant 1.000000e+00 : f32
    %140 = vector.broadcast %cst_24 : f32 to vector<4x32xf32>
    %141 = arith.addf %140, %139 : vector<4x32xf32>
    %142 = arith.divf %140, %141 : vector<4x32xf32>
    %143 = vector.extract_strided_slice %136 {offsets = [0, 32], sizes = [4, 32], strides = [1, 1]} : vector<4x128xf32> to vector<4x32xf32>
    %144 = arith.negf %143 : vector<4x32xf32>
    %145 = math.exp %144 : vector<4x32xf32>
    %cst_25 = arith.constant 1.000000e+00 : f32
    %146 = vector.broadcast %cst_25 : f32 to vector<4x32xf32>
    %147 = arith.addf %146, %145 : vector<4x32xf32>
    %148 = arith.divf %146, %147 : vector<4x32xf32>
    %149 = vector.extract_strided_slice %136 {offsets = [0, 64], sizes = [4, 32], strides = [1, 1]} : vector<4x128xf32> to vector<4x32xf32>
    %150 = math.tanh %149 : vector<4x32xf32>
    %151 = vector.extract_strided_slice %136 {offsets = [0, 96], sizes = [4, 32], strides = [1, 1]} : vector<4x128xf32> to vector<4x32xf32>
    %152 = arith.negf %151 : vector<4x32xf32>
    %153 = math.exp %152 : vector<4x32xf32>
    %cst_26 = arith.constant 1.000000e+00 : f32
    %154 = vector.broadcast %cst_26 : f32 to vector<4x32xf32>
    %155 = arith.addf %154, %153 : vector<4x32xf32>
    %156 = arith.divf %154, %155 : vector<4x32xf32>
    %157 = tpu.concatenate %126, %127 in 0 : vector<2x32xf32>, vector<2x32xf32> -> vector<4x32xf32>
    %158 = arith.mulf %148, %157 : vector<4x32xf32>
    %159 = arith.mulf %142, %150 : vector<4x32xf32>
    %160 = arith.addf %158, %159 : vector<4x32xf32>
    %161 = math.tanh %160 : vector<4x32xf32>
    %162 = arith.mulf %156, %161 : vector<4x32xf32>
    %163 = vector.extract_strided_slice %162 {offsets = [0, 0], sizes = [2, 32], strides = [1, 1]} : vector<4x32xf32> to vector<2x32xf32>
    %164 = vector.extract_strided_slice %162 {offsets = [2, 0], sizes = [2, 32], strides = [1, 1]} : vector<4x32xf32> to vector<2x32xf32>
    %165 = vector.extract_strided_slice %160 {offsets = [0, 0], sizes = [2, 32], strides = [1, 1]} : vector<4x32xf32> to vector<2x32xf32>
    %166 = vector.extract_strided_slice %160 {offsets = [2, 0], sizes = [2, 32], strides = [1, 1]} : vector<4x32xf32> to vector<2x32xf32>
    %167 = vector.extract_strided_slice %6 {offsets = [8, 0], sizes = [2, 128], strides = [1, 1]} : vector<16x256xf32> to vector<2x128xf32>
    %168 = vector.extract_strided_slice %6 {offsets = [6, 128], sizes = [2, 128], strides = [1, 1]} : vector<16x256xf32> to vector<2x128xf32>
    %169 = tpu.concatenate %163, %164 in 0 : vector<2x32xf32>, vector<2x32xf32> -> vector<4x32xf32>
    %cst_27 = arith.constant dense<0.000000e+00> : vector<4x256xf32>
    %170 = tpu.matmul %169, %2, %cst_27 {dimension_numbers = #tpu.dot_dimension_numbers<[1], [0], [0], [1], [0, 0, 1, 1], [], []>} : vector<4x32xf32>, vector<32x256xf32>, vector<4x256xf32> -> vector<4x256xf32>
    %171 = tpu.concatenate %167, %168 in 0 : vector<2x128xf32>, vector<2x128xf32> -> vector<4x128xf32>
    %172 = vector.extract_strided_slice %170 {offsets = [0, 0], sizes = [2, 128], strides = [1, 1]} : vector<4x256xf32> to vector<2x128xf32>
    %173 = vector.extract_strided_slice %170 {offsets = [2, 128], sizes = [2, 128], strides = [1, 1]} : vector<4x256xf32> to vector<2x128xf32>
    %174 = tpu.concatenate %172, %173 in 0 : vector<2x128xf32>, vector<2x128xf32> -> vector<4x128xf32>
    %175 = arith.addf %171, %174 : vector<4x128xf32>
    %176 = vector.extract_strided_slice %175 {offsets = [0, 0], sizes = [4, 32], strides = [1, 1]} : vector<4x128xf32> to vector<4x32xf32>
    %177 = arith.negf %176 : vector<4x32xf32>
    %178 = math.exp %177 : vector<4x32xf32>
    %cst_28 = arith.constant 1.000000e+00 : f32
    %179 = vector.broadcast %cst_28 : f32 to vector<4x32xf32>
    %180 = arith.addf %179, %178 : vector<4x32xf32>
    %181 = arith.divf %179, %180 : vector<4x32xf32>
    %182 = vector.extract_strided_slice %175 {offsets = [0, 32], sizes = [4, 32], strides = [1, 1]} : vector<4x128xf32> to vector<4x32xf32>
    %183 = arith.negf %182 : vector<4x32xf32>
    %184 = math.exp %183 : vector<4x32xf32>
    %cst_29 = arith.constant 1.000000e+00 : f32
    %185 = vector.broadcast %cst_29 : f32 to vector<4x32xf32>
    %186 = arith.addf %185, %184 : vector<4x32xf32>
    %187 = arith.divf %185, %186 : vector<4x32xf32>
    %188 = vector.extract_strided_slice %175 {offsets = [0, 64], sizes = [4, 32], strides = [1, 1]} : vector<4x128xf32> to vector<4x32xf32>
    %189 = math.tanh %188 : vector<4x32xf32>
    %190 = vector.extract_strided_slice %175 {offsets = [0, 96], sizes = [4, 32], strides = [1, 1]} : vector<4x128xf32> to vector<4x32xf32>
    %191 = arith.negf %190 : vector<4x32xf32>
    %192 = math.exp %191 : vector<4x32xf32>
    %cst_30 = arith.constant 1.000000e+00 : f32
    %193 = vector.broadcast %cst_30 : f32 to vector<4x32xf32>
    %194 = arith.addf %193, %192 : vector<4x32xf32>
    %195 = arith.divf %193, %194 : vector<4x32xf32>
    %196 = tpu.concatenate %165, %166 in 0 : vector<2x32xf32>, vector<2x32xf32> -> vector<4x32xf32>
    %197 = arith.mulf %187, %196 : vector<4x32xf32>
    %198 = arith.mulf %181, %189 : vector<4x32xf32>
    %199 = arith.addf %197, %198 : vector<4x32xf32>
    %200 = math.tanh %199 : vector<4x32xf32>
    %201 = arith.mulf %195, %200 : vector<4x32xf32>
    %202 = vector.extract_strided_slice %201 {offsets = [0, 0], sizes = [2, 32], strides = [1, 1]} : vector<4x32xf32> to vector<2x32xf32>
    %203 = vector.extract_strided_slice %201 {offsets = [2, 0], sizes = [2, 32], strides = [1, 1]} : vector<4x32xf32> to vector<2x32xf32>
    %204 = vector.extract_strided_slice %199 {offsets = [0, 0], sizes = [2, 32], strides = [1, 1]} : vector<4x32xf32> to vector<2x32xf32>
    %205 = vector.extract_strided_slice %199 {offsets = [2, 0], sizes = [2, 32], strides = [1, 1]} : vector<4x32xf32> to vector<2x32xf32>
    %206 = vector.extract_strided_slice %6 {offsets = [10, 0], sizes = [2, 128], strides = [1, 1]} : vector<16x256xf32> to vector<2x128xf32>
    %207 = vector.extract_strided_slice %6 {offsets = [4, 128], sizes = [2, 128], strides = [1, 1]} : vector<16x256xf32> to vector<2x128xf32>
    %208 = tpu.concatenate %202, %203 in 0 : vector<2x32xf32>, vector<2x32xf32> -> vector<4x32xf32>
    %cst_31 = arith.constant dense<0.000000e+00> : vector<4x256xf32>
    %209 = tpu.matmul %208, %2, %cst_31 {dimension_numbers = #tpu.dot_dimension_numbers<[1], [0], [0], [1], [0, 0, 1, 1], [], []>} : vector<4x32xf32>, vector<32x256xf32>, vector<4x256xf32> -> vector<4x256xf32>
    %210 = tpu.concatenate %206, %207 in 0 : vector<2x128xf32>, vector<2x128xf32> -> vector<4x128xf32>
    %211 = vector.extract_strided_slice %209 {offsets = [0, 0], sizes = [2, 128], strides = [1, 1]} : vector<4x256xf32> to vector<2x128xf32>
    %212 = vector.extract_strided_slice %209 {offsets = [2, 128], sizes = [2, 128], strides = [1, 1]} : vector<4x256xf32> to vector<2x128xf32>
    %213 = tpu.concatenate %211, %212 in 0 : vector<2x128xf32>, vector<2x128xf32> -> vector<4x128xf32>
    %214 = arith.addf %210, %213 : vector<4x128xf32>
    %215 = vector.extract_strided_slice %214 {offsets = [0, 0], sizes = [4, 32], strides = [1, 1]} : vector<4x128xf32> to vector<4x32xf32>
    %216 = arith.negf %215 : vector<4x32xf32>
    %217 = math.exp %216 : vector<4x32xf32>
    %cst_32 = arith.constant 1.000000e+00 : f32
    %218 = vector.broadcast %cst_32 : f32 to vector<4x32xf32>
    %219 = arith.addf %218, %217 : vector<4x32xf32>
    %220 = arith.divf %218, %219 : vector<4x32xf32>
    %221 = vector.extract_strided_slice %214 {offsets = [0, 32], sizes = [4, 32], strides = [1, 1]} : vector<4x128xf32> to vector<4x32xf32>
    %222 = arith.negf %221 : vector<4x32xf32>
    %223 = math.exp %222 : vector<4x32xf32>
    %cst_33 = arith.constant 1.000000e+00 : f32
    %224 = vector.broadcast %cst_33 : f32 to vector<4x32xf32>
    %225 = arith.addf %224, %223 : vector<4x32xf32>
    %226 = arith.divf %224, %225 : vector<4x32xf32>
    %227 = vector.extract_strided_slice %214 {offsets = [0, 64], sizes = [4, 32], strides = [1, 1]} : vector<4x128xf32> to vector<4x32xf32>
    %228 = math.tanh %227 : vector<4x32xf32>
    %229 = vector.extract_strided_slice %214 {offsets = [0, 96], sizes = [4, 32], strides = [1, 1]} : vector<4x128xf32> to vector<4x32xf32>
    %230 = arith.negf %229 : vector<4x32xf32>
    %231 = math.exp %230 : vector<4x32xf32>
    %cst_34 = arith.constant 1.000000e+00 : f32
    %232 = vector.broadcast %cst_34 : f32 to vector<4x32xf32>
    %233 = arith.addf %232, %231 : vector<4x32xf32>
    %234 = arith.divf %232, %233 : vector<4x32xf32>
    %235 = tpu.concatenate %204, %205 in 0 : vector<2x32xf32>, vector<2x32xf32> -> vector<4x32xf32>
    %236 = arith.mulf %226, %235 : vector<4x32xf32>
    %237 = arith.mulf %220, %228 : vector<4x32xf32>
    %238 = arith.addf %236, %237 : vector<4x32xf32>
    %239 = math.tanh %238 : vector<4x32xf32>
    %240 = arith.mulf %234, %239 : vector<4x32xf32>
    %241 = vector.extract_strided_slice %240 {offsets = [0, 0], sizes = [2, 32], strides = [1, 1]} : vector<4x32xf32> to vector<2x32xf32>
    %242 = vector.extract_strided_slice %240 {offsets = [2, 0], sizes = [2, 32], strides = [1, 1]} : vector<4x32xf32> to vector<2x32xf32>
    %243 = vector.extract_strided_slice %238 {offsets = [0, 0], sizes = [2, 32], strides = [1, 1]} : vector<4x32xf32> to vector<2x32xf32>
    %244 = vector.extract_strided_slice %238 {offsets = [2, 0], sizes = [2, 32], strides = [1, 1]} : vector<4x32xf32> to vector<2x32xf32>
    %245 = vector.extract_strided_slice %6 {offsets = [12, 0], sizes = [2, 128], strides = [1, 1]} : vector<16x256xf32> to vector<2x128xf32>
    %246 = vector.extract_strided_slice %6 {offsets = [2, 128], sizes = [2, 128], strides = [1, 1]} : vector<16x256xf32> to vector<2x128xf32>
    %247 = tpu.concatenate %241, %242 in 0 : vector<2x32xf32>, vector<2x32xf32> -> vector<4x32xf32>
    %cst_35 = arith.constant dense<0.000000e+00> : vector<4x256xf32>
    %248 = tpu.matmul %247, %2, %cst_35 {dimension_numbers = #tpu.dot_dimension_numbers<[1], [0], [0], [1], [0, 0, 1, 1], [], []>} : vector<4x32xf32>, vector<32x256xf32>, vector<4x256xf32> -> vector<4x256xf32>
    %249 = tpu.concatenate %245, %246 in 0 : vector<2x128xf32>, vector<2x128xf32> -> vector<4x128xf32>
    %250 = vector.extract_strided_slice %248 {offsets = [0, 0], sizes = [2, 128], strides = [1, 1]} : vector<4x256xf32> to vector<2x128xf32>
    %251 = vector.extract_strided_slice %248 {offsets = [2, 128], sizes = [2, 128], strides = [1, 1]} : vector<4x256xf32> to vector<2x128xf32>
    %252 = tpu.concatenate %250, %251 in 0 : vector<2x128xf32>, vector<2x128xf32> -> vector<4x128xf32>
    %253 = arith.addf %249, %252 : vector<4x128xf32>
    %254 = vector.extract_strided_slice %253 {offsets = [0, 0], sizes = [4, 32], strides = [1, 1]} : vector<4x128xf32> to vector<4x32xf32>
    %255 = arith.negf %254 : vector<4x32xf32>
    %256 = math.exp %255 : vector<4x32xf32>
    %cst_36 = arith.constant 1.000000e+00 : f32
    %257 = vector.broadcast %cst_36 : f32 to vector<4x32xf32>
    %258 = arith.addf %257, %256 : vector<4x32xf32>
    %259 = arith.divf %257, %258 : vector<4x32xf32>
    %260 = vector.extract_strided_slice %253 {offsets = [0, 32], sizes = [4, 32], strides = [1, 1]} : vector<4x128xf32> to vector<4x32xf32>
    %261 = arith.negf %260 : vector<4x32xf32>
    %262 = math.exp %261 : vector<4x32xf32>
    %cst_37 = arith.constant 1.000000e+00 : f32
    %263 = vector.broadcast %cst_37 : f32 to vector<4x32xf32>
    %264 = arith.addf %263, %262 : vector<4x32xf32>
    %265 = arith.divf %263, %264 : vector<4x32xf32>
    %266 = vector.extract_strided_slice %253 {offsets = [0, 64], sizes = [4, 32], strides = [1, 1]} : vector<4x128xf32> to vector<4x32xf32>
    %267 = math.tanh %266 : vector<4x32xf32>
    %268 = vector.extract_strided_slice %253 {offsets = [0, 96], sizes = [4, 32], strides = [1, 1]} : vector<4x128xf32> to vector<4x32xf32>
    %269 = arith.negf %268 : vector<4x32xf32>
    %270 = math.exp %269 : vector<4x32xf32>
    %cst_38 = arith.constant 1.000000e+00 : f32
    %271 = vector.broadcast %cst_38 : f32 to vector<4x32xf32>
    %272 = arith.addf %271, %270 : vector<4x32xf32>
    %273 = arith.divf %271, %272 : vector<4x32xf32>
    %274 = tpu.concatenate %243, %244 in 0 : vector<2x32xf32>, vector<2x32xf32> -> vector<4x32xf32>
    %275 = arith.mulf %265, %274 : vector<4x32xf32>
    %276 = arith.mulf %259, %267 : vector<4x32xf32>
    %277 = arith.addf %275, %276 : vector<4x32xf32>
    %278 = math.tanh %277 : vector<4x32xf32>
    %279 = arith.mulf %273, %278 : vector<4x32xf32>
    %280 = vector.extract_strided_slice %279 {offsets = [0, 0], sizes = [2, 32], strides = [1, 1]} : vector<4x32xf32> to vector<2x32xf32>
    %281 = vector.extract_strided_slice %279 {offsets = [2, 0], sizes = [2, 32], strides = [1, 1]} : vector<4x32xf32> to vector<2x32xf32>
    %282 = vector.extract_strided_slice %277 {offsets = [0, 0], sizes = [2, 32], strides = [1, 1]} : vector<4x32xf32> to vector<2x32xf32>
    %283 = vector.extract_strided_slice %277 {offsets = [2, 0], sizes = [2, 32], strides = [1, 1]} : vector<4x32xf32> to vector<2x32xf32>
    %284 = vector.extract_strided_slice %6 {offsets = [14, 0], sizes = [2, 128], strides = [1, 1]} : vector<16x256xf32> to vector<2x128xf32>
    %285 = vector.extract_strided_slice %6 {offsets = [0, 128], sizes = [2, 128], strides = [1, 1]} : vector<16x256xf32> to vector<2x128xf32>
    %286 = tpu.concatenate %280, %281 in 0 : vector<2x32xf32>, vector<2x32xf32> -> vector<4x32xf32>
    %cst_39 = arith.constant dense<0.000000e+00> : vector<4x256xf32>
    %287 = tpu.matmul %286, %2, %cst_39 {dimension_numbers = #tpu.dot_dimension_numbers<[1], [0], [0], [1], [0, 0, 1, 1], [], []>} : vector<4x32xf32>, vector<32x256xf32>, vector<4x256xf32> -> vector<4x256xf32>
    %288 = tpu.concatenate %284, %285 in 0 : vector<2x128xf32>, vector<2x128xf32> -> vector<4x128xf32>
    %289 = vector.extract_strided_slice %287 {offsets = [0, 0], sizes = [2, 128], strides = [1, 1]} : vector<4x256xf32> to vector<2x128xf32>
    %290 = vector.extract_strided_slice %287 {offsets = [2, 128], sizes = [2, 128], strides = [1, 1]} : vector<4x256xf32> to vector<2x128xf32>
    %291 = tpu.concatenate %289, %290 in 0 : vector<2x128xf32>, vector<2x128xf32> -> vector<4x128xf32>
    %292 = arith.addf %288, %291 : vector<4x128xf32>
    %293 = vector.extract_strided_slice %292 {offsets = [0, 0], sizes = [4, 32], strides = [1, 1]} : vector<4x128xf32> to vector<4x32xf32>
    %294 = arith.negf %293 : vector<4x32xf32>
    %295 = math.exp %294 : vector<4x32xf32>
    %cst_40 = arith.constant 1.000000e+00 : f32
    %296 = vector.broadcast %cst_40 : f32 to vector<4x32xf32>
    %297 = arith.addf %296, %295 : vector<4x32xf32>
    %298 = arith.divf %296, %297 : vector<4x32xf32>
    %299 = vector.extract_strided_slice %292 {offsets = [0, 32], sizes = [4, 32], strides = [1, 1]} : vector<4x128xf32> to vector<4x32xf32>
    %300 = arith.negf %299 : vector<4x32xf32>
    %301 = math.exp %300 : vector<4x32xf32>
    %cst_41 = arith.constant 1.000000e+00 : f32
    %302 = vector.broadcast %cst_41 : f32 to vector<4x32xf32>
    %303 = arith.addf %302, %301 : vector<4x32xf32>
    %304 = arith.divf %302, %303 : vector<4x32xf32>
    %305 = vector.extract_strided_slice %292 {offsets = [0, 64], sizes = [4, 32], strides = [1, 1]} : vector<4x128xf32> to vector<4x32xf32>
    %306 = math.tanh %305 : vector<4x32xf32>
    %307 = vector.extract_strided_slice %292 {offsets = [0, 96], sizes = [4, 32], strides = [1, 1]} : vector<4x128xf32> to vector<4x32xf32>
    %308 = arith.negf %307 : vector<4x32xf32>
    %309 = math.exp %308 : vector<4x32xf32>
    %cst_42 = arith.constant 1.000000e+00 : f32
    %310 = vector.broadcast %cst_42 : f32 to vector<4x32xf32>
    %311 = arith.addf %310, %309 : vector<4x32xf32>
    %312 = arith.divf %310, %311 : vector<4x32xf32>
    %313 = tpu.concatenate %282, %283 in 0 : vector<2x32xf32>, vector<2x32xf32> -> vector<4x32xf32>
    %314 = arith.mulf %304, %313 : vector<4x32xf32>
    %315 = arith.mulf %298, %306 : vector<4x32xf32>
    %316 = arith.addf %314, %315 : vector<4x32xf32>
    %317 = math.tanh %316 : vector<4x32xf32>
    %318 = arith.mulf %312, %317 : vector<4x32xf32>
    %319 = vector.extract_strided_slice %318 {offsets = [0, 0], sizes = [2, 32], strides = [1, 1]} : vector<4x32xf32> to vector<2x32xf32>
    %320 = vector.extract_strided_slice %318 {offsets = [2, 0], sizes = [2, 32], strides = [1, 1]} : vector<4x32xf32> to vector<2x32xf32>
    %321 = tpu.concatenate %46, %320 in 1 : vector<2x32xf32>, vector<2x32xf32> -> vector<2x64xf32>
    %322 = tpu.concatenate %85, %281 in 1 : vector<2x32xf32>, vector<2x32xf32> -> vector<2x64xf32>
    %323 = tpu.concatenate %124, %242 in 1 : vector<2x32xf32>, vector<2x32xf32> -> vector<2x64xf32>
    %324 = tpu.concatenate %163, %203 in 1 : vector<2x32xf32>, vector<2x32xf32> -> vector<2x64xf32>
    %325 = tpu.concatenate %202, %164 in 1 : vector<2x32xf32>, vector<2x32xf32> -> vector<2x64xf32>
    %326 = tpu.concatenate %241, %125 in 1 : vector<2x32xf32>, vector<2x32xf32> -> vector<2x64xf32>
    %327 = tpu.concatenate %280, %86 in 1 : vector<2x32xf32>, vector<2x32xf32> -> vector<2x64xf32>
    %328 = tpu.concatenate %319, %47 in 1 : vector<2x32xf32>, vector<2x32xf32> -> vector<2x64xf32>
    %329 = tpu.concatenate %321, %322, %323, %324, %325, %326, %327, %328 in 0 : vector<2x64xf32>, vector<2x64xf32>, vector<2x64xf32>, vector<2x64xf32>, vector<2x64xf32>, vector<2x64xf32>, vector<2x64xf32>, vector<2x64xf32> -> vector<16x64xf32>
    %c0_43 = arith.constant 0 : index
    %c0_44 = arith.constant 0 : index
    %330 = vector.load %arg5[%c0_43, %c0_44] : memref<64x256xf32, #tpu.memory_space<vmem>>, vector<64x256xf32>
    %c0_45 = arith.constant 0 : index
    %c0_46 = arith.constant 0 : index
    %331 = vector.load %arg6[%c0_45, %c0_46] : memref<32x256xf32, #tpu.memory_space<vmem>>, vector<32x256xf32>
    %c0_47 = arith.constant 0 : index
    %c0_48 = arith.constant 0 : index
    %332 = vector.load %arg7[%c0_47, %c0_48] : memref<1x256xf32, #tpu.memory_space<vmem>>, vector<1x256xf32>
    %cst_49 = arith.constant dense<0.000000e+00> : vector<16x256xf32>
    %333 = tpu.matmul %329, %330, %cst_49 {dimension_numbers = #tpu.dot_dimension_numbers<[1], [0], [0], [1], [0, 0, 1, 1], [], []>} : vector<16x64xf32>, vector<64x256xf32>, vector<16x256xf32> -> vector<16x256xf32>
    %334 = vector.broadcast %332 : vector<1x256xf32> to vector<16x256xf32>
    %335 = arith.addf %333, %334 : vector<16x256xf32>
    %cst_50 = arith.constant 0.000000e+00 : f32
    %336 = vector.broadcast %cst_50 : f32 to vector<2x32xf32>
    %cst_51 = arith.constant 0.000000e+00 : f32
    %337 = vector.broadcast %cst_51 : f32 to vector<2x32xf32>
    %cst_52 = arith.constant 0.000000e+00 : f32
    %338 = vector.broadcast %cst_52 : f32 to vector<2x32xf32>
    %cst_53 = arith.constant 0.000000e+00 : f32
    %339 = vector.broadcast %cst_53 : f32 to vector<2x32xf32>
    %340 = vector.extract_strided_slice %335 {offsets = [0, 0], sizes = [2, 128], strides = [1, 1]} : vector<16x256xf32> to vector<2x128xf32>
    %341 = vector.extract_strided_slice %335 {offsets = [14, 128], sizes = [2, 128], strides = [1, 1]} : vector<16x256xf32> to vector<2x128xf32>
    %342 = tpu.concatenate %336, %338 in 0 : vector<2x32xf32>, vector<2x32xf32> -> vector<4x32xf32>
    %cst_54 = arith.constant dense<0.000000e+00> : vector<4x256xf32>
    %343 = tpu.matmul %342, %331, %cst_54 {dimension_numbers = #tpu.dot_dimension_numbers<[1], [0], [0], [1], [0, 0, 1, 1], [], []>} : vector<4x32xf32>, vector<32x256xf32>, vector<4x256xf32> -> vector<4x256xf32>
    %344 = tpu.concatenate %340, %341 in 0 : vector<2x128xf32>, vector<2x128xf32> -> vector<4x128xf32>
    %345 = vector.extract_strided_slice %343 {offsets = [0, 0], sizes = [2, 128], strides = [1, 1]} : vector<4x256xf32> to vector<2x128xf32>
    %346 = vector.extract_strided_slice %343 {offsets = [2, 128], sizes = [2, 128], strides = [1, 1]} : vector<4x256xf32> to vector<2x128xf32>
    %347 = tpu.concatenate %345, %346 in 0 : vector<2x128xf32>, vector<2x128xf32> -> vector<4x128xf32>
    %348 = arith.addf %344, %347 : vector<4x128xf32>
    %349 = vector.extract_strided_slice %348 {offsets = [0, 0], sizes = [4, 32], strides = [1, 1]} : vector<4x128xf32> to vector<4x32xf32>
    %350 = arith.negf %349 : vector<4x32xf32>
    %351 = math.exp %350 : vector<4x32xf32>
    %cst_55 = arith.constant 1.000000e+00 : f32
    %352 = vector.broadcast %cst_55 : f32 to vector<4x32xf32>
    %353 = arith.addf %352, %351 : vector<4x32xf32>
    %354 = arith.divf %352, %353 : vector<4x32xf32>
    %355 = vector.extract_strided_slice %348 {offsets = [0, 32], sizes = [4, 32], strides = [1, 1]} : vector<4x128xf32> to vector<4x32xf32>
    %356 = arith.negf %355 : vector<4x32xf32>
    %357 = math.exp %356 : vector<4x32xf32>
    %cst_56 = arith.constant 1.000000e+00 : f32
    %358 = vector.broadcast %cst_56 : f32 to vector<4x32xf32>
    %359 = arith.addf %358, %357 : vector<4x32xf32>
    %360 = arith.divf %358, %359 : vector<4x32xf32>
    %361 = vector.extract_strided_slice %348 {offsets = [0, 64], sizes = [4, 32], strides = [1, 1]} : vector<4x128xf32> to vector<4x32xf32>
    %362 = math.tanh %361 : vector<4x32xf32>
    %363 = vector.extract_strided_slice %348 {offsets = [0, 96], sizes = [4, 32], strides = [1, 1]} : vector<4x128xf32> to vector<4x32xf32>
    %364 = arith.negf %363 : vector<4x32xf32>
    %365 = math.exp %364 : vector<4x32xf32>
    %cst_57 = arith.constant 1.000000e+00 : f32
    %366 = vector.broadcast %cst_57 : f32 to vector<4x32xf32>
    %367 = arith.addf %366, %365 : vector<4x32xf32>
    %368 = arith.divf %366, %367 : vector<4x32xf32>
    %369 = tpu.concatenate %337, %339 in 0 : vector<2x32xf32>, vector<2x32xf32> -> vector<4x32xf32>
    %370 = arith.mulf %360, %369 : vector<4x32xf32>
    %371 = arith.mulf %354, %362 : vector<4x32xf32>
    %372 = arith.addf %370, %371 : vector<4x32xf32>
    %373 = math.tanh %372 : vector<4x32xf32>
    %374 = arith.mulf %368, %373 : vector<4x32xf32>
    %375 = vector.extract_strided_slice %374 {offsets = [0, 0], sizes = [2, 32], strides = [1, 1]} : vector<4x32xf32> to vector<2x32xf32>
    %376 = vector.extract_strided_slice %374 {offsets = [2, 0], sizes = [2, 32], strides = [1, 1]} : vector<4x32xf32> to vector<2x32xf32>
    %377 = vector.extract_strided_slice %372 {offsets = [0, 0], sizes = [2, 32], strides = [1, 1]} : vector<4x32xf32> to vector<2x32xf32>
    %378 = vector.extract_strided_slice %372 {offsets = [2, 0], sizes = [2, 32], strides = [1, 1]} : vector<4x32xf32> to vector<2x32xf32>
    %379 = vector.extract_strided_slice %335 {offsets = [2, 0], sizes = [2, 128], strides = [1, 1]} : vector<16x256xf32> to vector<2x128xf32>
    %380 = vector.extract_strided_slice %335 {offsets = [12, 128], sizes = [2, 128], strides = [1, 1]} : vector<16x256xf32> to vector<2x128xf32>
    %381 = tpu.concatenate %375, %376 in 0 : vector<2x32xf32>, vector<2x32xf32> -> vector<4x32xf32>
    %cst_58 = arith.constant dense<0.000000e+00> : vector<4x256xf32>
    %382 = tpu.matmul %381, %331, %cst_58 {dimension_numbers = #tpu.dot_dimension_numbers<[1], [0], [0], [1], [0, 0, 1, 1], [], []>} : vector<4x32xf32>, vector<32x256xf32>, vector<4x256xf32> -> vector<4x256xf32>
    %383 = tpu.concatenate %379, %380 in 0 : vector<2x128xf32>, vector<2x128xf32> -> vector<4x128xf32>
    %384 = vector.extract_strided_slice %382 {offsets = [0, 0], sizes = [2, 128], strides = [1, 1]} : vector<4x256xf32> to vector<2x128xf32>
    %385 = vector.extract_strided_slice %382 {offsets = [2, 128], sizes = [2, 128], strides = [1, 1]} : vector<4x256xf32> to vector<2x128xf32>
    %386 = tpu.concatenate %384, %385 in 0 : vector<2x128xf32>, vector<2x128xf32> -> vector<4x128xf32>
    %387 = arith.addf %383, %386 : vector<4x128xf32>
    %388 = vector.extract_strided_slice %387 {offsets = [0, 0], sizes = [4, 32], strides = [1, 1]} : vector<4x128xf32> to vector<4x32xf32>
    %389 = arith.negf %388 : vector<4x32xf32>
    %390 = math.exp %389 : vector<4x32xf32>
    %cst_59 = arith.constant 1.000000e+00 : f32
    %391 = vector.broadcast %cst_59 : f32 to vector<4x32xf32>
    %392 = arith.addf %391, %390 : vector<4x32xf32>
    %393 = arith.divf %391, %392 : vector<4x32xf32>
    %394 = vector.extract_strided_slice %387 {offsets = [0, 32], sizes = [4, 32], strides = [1, 1]} : vector<4x128xf32> to vector<4x32xf32>
    %395 = arith.negf %394 : vector<4x32xf32>
    %396 = math.exp %395 : vector<4x32xf32>
    %cst_60 = arith.constant 1.000000e+00 : f32
    %397 = vector.broadcast %cst_60 : f32 to vector<4x32xf32>
    %398 = arith.addf %397, %396 : vector<4x32xf32>
    %399 = arith.divf %397, %398 : vector<4x32xf32>
    %400 = vector.extract_strided_slice %387 {offsets = [0, 64], sizes = [4, 32], strides = [1, 1]} : vector<4x128xf32> to vector<4x32xf32>
    %401 = math.tanh %400 : vector<4x32xf32>
    %402 = vector.extract_strided_slice %387 {offsets = [0, 96], sizes = [4, 32], strides = [1, 1]} : vector<4x128xf32> to vector<4x32xf32>
    %403 = arith.negf %402 : vector<4x32xf32>
    %404 = math.exp %403 : vector<4x32xf32>
    %cst_61 = arith.constant 1.000000e+00 : f32
    %405 = vector.broadcast %cst_61 : f32 to vector<4x32xf32>
    %406 = arith.addf %405, %404 : vector<4x32xf32>
    %407 = arith.divf %405, %406 : vector<4x32xf32>
    %408 = tpu.concatenate %377, %378 in 0 : vector<2x32xf32>, vector<2x32xf32> -> vector<4x32xf32>
    %409 = arith.mulf %399, %408 : vector<4x32xf32>
    %410 = arith.mulf %393, %401 : vector<4x32xf32>
    %411 = arith.addf %409, %410 : vector<4x32xf32>
    %412 = math.tanh %411 : vector<4x32xf32>
    %413 = arith.mulf %407, %412 : vector<4x32xf32>
    %414 = vector.extract_strided_slice %413 {offsets = [0, 0], sizes = [2, 32], strides = [1, 1]} : vector<4x32xf32> to vector<2x32xf32>
    %415 = vector.extract_strided_slice %413 {offsets = [2, 0], sizes = [2, 32], strides = [1, 1]} : vector<4x32xf32> to vector<2x32xf32>
    %416 = vector.extract_strided_slice %411 {offsets = [0, 0], sizes = [2, 32], strides = [1, 1]} : vector<4x32xf32> to vector<2x32xf32>
    %417 = vector.extract_strided_slice %411 {offsets = [2, 0], sizes = [2, 32], strides = [1, 1]} : vector<4x32xf32> to vector<2x32xf32>
    %418 = vector.extract_strided_slice %335 {offsets = [4, 0], sizes = [2, 128], strides = [1, 1]} : vector<16x256xf32> to vector<2x128xf32>
    %419 = vector.extract_strided_slice %335 {offsets = [10, 128], sizes = [2, 128], strides = [1, 1]} : vector<16x256xf32> to vector<2x128xf32>
    %420 = tpu.concatenate %414, %415 in 0 : vector<2x32xf32>, vector<2x32xf32> -> vector<4x32xf32>
    %cst_62 = arith.constant dense<0.000000e+00> : vector<4x256xf32>
    %421 = tpu.matmul %420, %331, %cst_62 {dimension_numbers = #tpu.dot_dimension_numbers<[1], [0], [0], [1], [0, 0, 1, 1], [], []>} : vector<4x32xf32>, vector<32x256xf32>, vector<4x256xf32> -> vector<4x256xf32>
    %422 = tpu.concatenate %418, %419 in 0 : vector<2x128xf32>, vector<2x128xf32> -> vector<4x128xf32>
    %423 = vector.extract_strided_slice %421 {offsets = [0, 0], sizes = [2, 128], strides = [1, 1]} : vector<4x256xf32> to vector<2x128xf32>
    %424 = vector.extract_strided_slice %421 {offsets = [2, 128], sizes = [2, 128], strides = [1, 1]} : vector<4x256xf32> to vector<2x128xf32>
    %425 = tpu.concatenate %423, %424 in 0 : vector<2x128xf32>, vector<2x128xf32> -> vector<4x128xf32>
    %426 = arith.addf %422, %425 : vector<4x128xf32>
    %427 = vector.extract_strided_slice %426 {offsets = [0, 0], sizes = [4, 32], strides = [1, 1]} : vector<4x128xf32> to vector<4x32xf32>
    %428 = arith.negf %427 : vector<4x32xf32>
    %429 = math.exp %428 : vector<4x32xf32>
    %cst_63 = arith.constant 1.000000e+00 : f32
    %430 = vector.broadcast %cst_63 : f32 to vector<4x32xf32>
    %431 = arith.addf %430, %429 : vector<4x32xf32>
    %432 = arith.divf %430, %431 : vector<4x32xf32>
    %433 = vector.extract_strided_slice %426 {offsets = [0, 32], sizes = [4, 32], strides = [1, 1]} : vector<4x128xf32> to vector<4x32xf32>
    %434 = arith.negf %433 : vector<4x32xf32>
    %435 = math.exp %434 : vector<4x32xf32>
    %cst_64 = arith.constant 1.000000e+00 : f32
    %436 = vector.broadcast %cst_64 : f32 to vector<4x32xf32>
    %437 = arith.addf %436, %435 : vector<4x32xf32>
    %438 = arith.divf %436, %437 : vector<4x32xf32>
    %439 = vector.extract_strided_slice %426 {offsets = [0, 64], sizes = [4, 32], strides = [1, 1]} : vector<4x128xf32> to vector<4x32xf32>
    %440 = math.tanh %439 : vector<4x32xf32>
    %441 = vector.extract_strided_slice %426 {offsets = [0, 96], sizes = [4, 32], strides = [1, 1]} : vector<4x128xf32> to vector<4x32xf32>
    %442 = arith.negf %441 : vector<4x32xf32>
    %443 = math.exp %442 : vector<4x32xf32>
    %cst_65 = arith.constant 1.000000e+00 : f32
    %444 = vector.broadcast %cst_65 : f32 to vector<4x32xf32>
    %445 = arith.addf %444, %443 : vector<4x32xf32>
    %446 = arith.divf %444, %445 : vector<4x32xf32>
    %447 = tpu.concatenate %416, %417 in 0 : vector<2x32xf32>, vector<2x32xf32> -> vector<4x32xf32>
    %448 = arith.mulf %438, %447 : vector<4x32xf32>
    %449 = arith.mulf %432, %440 : vector<4x32xf32>
    %450 = arith.addf %448, %449 : vector<4x32xf32>
    %451 = math.tanh %450 : vector<4x32xf32>
    %452 = arith.mulf %446, %451 : vector<4x32xf32>
    %453 = vector.extract_strided_slice %452 {offsets = [0, 0], sizes = [2, 32], strides = [1, 1]} : vector<4x32xf32> to vector<2x32xf32>
    %454 = vector.extract_strided_slice %452 {offsets = [2, 0], sizes = [2, 32], strides = [1, 1]} : vector<4x32xf32> to vector<2x32xf32>
    %455 = vector.extract_strided_slice %450 {offsets = [0, 0], sizes = [2, 32], strides = [1, 1]} : vector<4x32xf32> to vector<2x32xf32>
    %456 = vector.extract_strided_slice %450 {offsets = [2, 0], sizes = [2, 32], strides = [1, 1]} : vector<4x32xf32> to vector<2x32xf32>
    %457 = vector.extract_strided_slice %335 {offsets = [6, 0], sizes = [2, 128], strides = [1, 1]} : vector<16x256xf32> to vector<2x128xf32>
    %458 = vector.extract_strided_slice %335 {offsets = [8, 128], sizes = [2, 128], strides = [1, 1]} : vector<16x256xf32> to vector<2x128xf32>
    %459 = tpu.concatenate %453, %454 in 0 : vector<2x32xf32>, vector<2x32xf32> -> vector<4x32xf32>
    %cst_66 = arith.constant dense<0.000000e+00> : vector<4x256xf32>
    %460 = tpu.matmul %459, %331, %cst_66 {dimension_numbers = #tpu.dot_dimension_numbers<[1], [0], [0], [1], [0, 0, 1, 1], [], []>} : vector<4x32xf32>, vector<32x256xf32>, vector<4x256xf32> -> vector<4x256xf32>
    %461 = tpu.concatenate %457, %458 in 0 : vector<2x128xf32>, vector<2x128xf32> -> vector<4x128xf32>
    %462 = vector.extract_strided_slice %460 {offsets = [0, 0], sizes = [2, 128], strides = [1, 1]} : vector<4x256xf32> to vector<2x128xf32>
    %463 = vector.extract_strided_slice %460 {offsets = [2, 128], sizes = [2, 128], strides = [1, 1]} : vector<4x256xf32> to vector<2x128xf32>
    %464 = tpu.concatenate %462, %463 in 0 : vector<2x128xf32>, vector<2x128xf32> -> vector<4x128xf32>
    %465 = arith.addf %461, %464 : vector<4x128xf32>
    %466 = vector.extract_strided_slice %465 {offsets = [0, 0], sizes = [4, 32], strides = [1, 1]} : vector<4x128xf32> to vector<4x32xf32>
    %467 = arith.negf %466 : vector<4x32xf32>
    %468 = math.exp %467 : vector<4x32xf32>
    %cst_67 = arith.constant 1.000000e+00 : f32
    %469 = vector.broadcast %cst_67 : f32 to vector<4x32xf32>
    %470 = arith.addf %469, %468 : vector<4x32xf32>
    %471 = arith.divf %469, %470 : vector<4x32xf32>
    %472 = vector.extract_strided_slice %465 {offsets = [0, 32], sizes = [4, 32], strides = [1, 1]} : vector<4x128xf32> to vector<4x32xf32>
    %473 = arith.negf %472 : vector<4x32xf32>
    %474 = math.exp %473 : vector<4x32xf32>
    %cst_68 = arith.constant 1.000000e+00 : f32
    %475 = vector.broadcast %cst_68 : f32 to vector<4x32xf32>
    %476 = arith.addf %475, %474 : vector<4x32xf32>
    %477 = arith.divf %475, %476 : vector<4x32xf32>
    %478 = vector.extract_strided_slice %465 {offsets = [0, 64], sizes = [4, 32], strides = [1, 1]} : vector<4x128xf32> to vector<4x32xf32>
    %479 = math.tanh %478 : vector<4x32xf32>
    %480 = vector.extract_strided_slice %465 {offsets = [0, 96], sizes = [4, 32], strides = [1, 1]} : vector<4x128xf32> to vector<4x32xf32>
    %481 = arith.negf %480 : vector<4x32xf32>
    %482 = math.exp %481 : vector<4x32xf32>
    %cst_69 = arith.constant 1.000000e+00 : f32
    %483 = vector.broadcast %cst_69 : f32 to vector<4x32xf32>
    %484 = arith.addf %483, %482 : vector<4x32xf32>
    %485 = arith.divf %483, %484 : vector<4x32xf32>
    %486 = tpu.concatenate %455, %456 in 0 : vector<2x32xf32>, vector<2x32xf32> -> vector<4x32xf32>
    %487 = arith.mulf %477, %486 : vector<4x32xf32>
    %488 = arith.mulf %471, %479 : vector<4x32xf32>
    %489 = arith.addf %487, %488 : vector<4x32xf32>
    %490 = math.tanh %489 : vector<4x32xf32>
    %491 = arith.mulf %485, %490 : vector<4x32xf32>
    %492 = vector.extract_strided_slice %491 {offsets = [0, 0], sizes = [2, 32], strides = [1, 1]} : vector<4x32xf32> to vector<2x32xf32>
    %493 = vector.extract_strided_slice %491 {offsets = [2, 0], sizes = [2, 32], strides = [1, 1]} : vector<4x32xf32> to vector<2x32xf32>
    %494 = vector.extract_strided_slice %489 {offsets = [0, 0], sizes = [2, 32], strides = [1, 1]} : vector<4x32xf32> to vector<2x32xf32>
    %495 = vector.extract_strided_slice %489 {offsets = [2, 0], sizes = [2, 32], strides = [1, 1]} : vector<4x32xf32> to vector<2x32xf32>
    %496 = vector.extract_strided_slice %335 {offsets = [8, 0], sizes = [2, 128], strides = [1, 1]} : vector<16x256xf32> to vector<2x128xf32>
    %497 = vector.extract_strided_slice %335 {offsets = [6, 128], sizes = [2, 128], strides = [1, 1]} : vector<16x256xf32> to vector<2x128xf32>
    %498 = tpu.concatenate %492, %493 in 0 : vector<2x32xf32>, vector<2x32xf32> -> vector<4x32xf32>
    %cst_70 = arith.constant dense<0.000000e+00> : vector<4x256xf32>
    %499 = tpu.matmul %498, %331, %cst_70 {dimension_numbers = #tpu.dot_dimension_numbers<[1], [0], [0], [1], [0, 0, 1, 1], [], []>} : vector<4x32xf32>, vector<32x256xf32>, vector<4x256xf32> -> vector<4x256xf32>
    %500 = tpu.concatenate %496, %497 in 0 : vector<2x128xf32>, vector<2x128xf32> -> vector<4x128xf32>
    %501 = vector.extract_strided_slice %499 {offsets = [0, 0], sizes = [2, 128], strides = [1, 1]} : vector<4x256xf32> to vector<2x128xf32>
    %502 = vector.extract_strided_slice %499 {offsets = [2, 128], sizes = [2, 128], strides = [1, 1]} : vector<4x256xf32> to vector<2x128xf32>
    %503 = tpu.concatenate %501, %502 in 0 : vector<2x128xf32>, vector<2x128xf32> -> vector<4x128xf32>
    %504 = arith.addf %500, %503 : vector<4x128xf32>
    %505 = vector.extract_strided_slice %504 {offsets = [0, 0], sizes = [4, 32], strides = [1, 1]} : vector<4x128xf32> to vector<4x32xf32>
    %506 = arith.negf %505 : vector<4x32xf32>
    %507 = math.exp %506 : vector<4x32xf32>
    %cst_71 = arith.constant 1.000000e+00 : f32
    %508 = vector.broadcast %cst_71 : f32 to vector<4x32xf32>
    %509 = arith.addf %508, %507 : vector<4x32xf32>
    %510 = arith.divf %508, %509 : vector<4x32xf32>
    %511 = vector.extract_strided_slice %504 {offsets = [0, 32], sizes = [4, 32], strides = [1, 1]} : vector<4x128xf32> to vector<4x32xf32>
    %512 = arith.negf %511 : vector<4x32xf32>
    %513 = math.exp %512 : vector<4x32xf32>
    %cst_72 = arith.constant 1.000000e+00 : f32
    %514 = vector.broadcast %cst_72 : f32 to vector<4x32xf32>
    %515 = arith.addf %514, %513 : vector<4x32xf32>
    %516 = arith.divf %514, %515 : vector<4x32xf32>
    %517 = vector.extract_strided_slice %504 {offsets = [0, 64], sizes = [4, 32], strides = [1, 1]} : vector<4x128xf32> to vector<4x32xf32>
    %518 = math.tanh %517 : vector<4x32xf32>
    %519 = vector.extract_strided_slice %504 {offsets = [0, 96], sizes = [4, 32], strides = [1, 1]} : vector<4x128xf32> to vector<4x32xf32>
    %520 = arith.negf %519 : vector<4x32xf32>
    %521 = math.exp %520 : vector<4x32xf32>
    %cst_73 = arith.constant 1.000000e+00 : f32
    %522 = vector.broadcast %cst_73 : f32 to vector<4x32xf32>
    %523 = arith.addf %522, %521 : vector<4x32xf32>
    %524 = arith.divf %522, %523 : vector<4x32xf32>
    %525 = tpu.concatenate %494, %495 in 0 : vector<2x32xf32>, vector<2x32xf32> -> vector<4x32xf32>
    %526 = arith.mulf %516, %525 : vector<4x32xf32>
    %527 = arith.mulf %510, %518 : vector<4x32xf32>
    %528 = arith.addf %526, %527 : vector<4x32xf32>
    %529 = math.tanh %528 : vector<4x32xf32>
    %530 = arith.mulf %524, %529 : vector<4x32xf32>
    %531 = vector.extract_strided_slice %530 {offsets = [0, 0], sizes = [2, 32], strides = [1, 1]} : vector<4x32xf32> to vector<2x32xf32>
    %532 = vector.extract_strided_slice %530 {offsets = [2, 0], sizes = [2, 32], strides = [1, 1]} : vector<4x32xf32> to vector<2x32xf32>
    %533 = vector.extract_strided_slice %528 {offsets = [0, 0], sizes = [2, 32], strides = [1, 1]} : vector<4x32xf32> to vector<2x32xf32>
    %534 = vector.extract_strided_slice %528 {offsets = [2, 0], sizes = [2, 32], strides = [1, 1]} : vector<4x32xf32> to vector<2x32xf32>
    %535 = vector.extract_strided_slice %335 {offsets = [10, 0], sizes = [2, 128], strides = [1, 1]} : vector<16x256xf32> to vector<2x128xf32>
    %536 = vector.extract_strided_slice %335 {offsets = [4, 128], sizes = [2, 128], strides = [1, 1]} : vector<16x256xf32> to vector<2x128xf32>
    %537 = tpu.concatenate %531, %532 in 0 : vector<2x32xf32>, vector<2x32xf32> -> vector<4x32xf32>
    %cst_74 = arith.constant dense<0.000000e+00> : vector<4x256xf32>
    %538 = tpu.matmul %537, %331, %cst_74 {dimension_numbers = #tpu.dot_dimension_numbers<[1], [0], [0], [1], [0, 0, 1, 1], [], []>} : vector<4x32xf32>, vector<32x256xf32>, vector<4x256xf32> -> vector<4x256xf32>
    %539 = tpu.concatenate %535, %536 in 0 : vector<2x128xf32>, vector<2x128xf32> -> vector<4x128xf32>
    %540 = vector.extract_strided_slice %538 {offsets = [0, 0], sizes = [2, 128], strides = [1, 1]} : vector<4x256xf32> to vector<2x128xf32>
    %541 = vector.extract_strided_slice %538 {offsets = [2, 128], sizes = [2, 128], strides = [1, 1]} : vector<4x256xf32> to vector<2x128xf32>
    %542 = tpu.concatenate %540, %541 in 0 : vector<2x128xf32>, vector<2x128xf32> -> vector<4x128xf32>
    %543 = arith.addf %539, %542 : vector<4x128xf32>
    %544 = vector.extract_strided_slice %543 {offsets = [0, 0], sizes = [4, 32], strides = [1, 1]} : vector<4x128xf32> to vector<4x32xf32>
    %545 = arith.negf %544 : vector<4x32xf32>
    %546 = math.exp %545 : vector<4x32xf32>
    %cst_75 = arith.constant 1.000000e+00 : f32
    %547 = vector.broadcast %cst_75 : f32 to vector<4x32xf32>
    %548 = arith.addf %547, %546 : vector<4x32xf32>
    %549 = arith.divf %547, %548 : vector<4x32xf32>
    %550 = vector.extract_strided_slice %543 {offsets = [0, 32], sizes = [4, 32], strides = [1, 1]} : vector<4x128xf32> to vector<4x32xf32>
    %551 = arith.negf %550 : vector<4x32xf32>
    %552 = math.exp %551 : vector<4x32xf32>
    %cst_76 = arith.constant 1.000000e+00 : f32
    %553 = vector.broadcast %cst_76 : f32 to vector<4x32xf32>
    %554 = arith.addf %553, %552 : vector<4x32xf32>
    %555 = arith.divf %553, %554 : vector<4x32xf32>
    %556 = vector.extract_strided_slice %543 {offsets = [0, 64], sizes = [4, 32], strides = [1, 1]} : vector<4x128xf32> to vector<4x32xf32>
    %557 = math.tanh %556 : vector<4x32xf32>
    %558 = vector.extract_strided_slice %543 {offsets = [0, 96], sizes = [4, 32], strides = [1, 1]} : vector<4x128xf32> to vector<4x32xf32>
    %559 = arith.negf %558 : vector<4x32xf32>
    %560 = math.exp %559 : vector<4x32xf32>
    %cst_77 = arith.constant 1.000000e+00 : f32
    %561 = vector.broadcast %cst_77 : f32 to vector<4x32xf32>
    %562 = arith.addf %561, %560 : vector<4x32xf32>
    %563 = arith.divf %561, %562 : vector<4x32xf32>
    %564 = tpu.concatenate %533, %534 in 0 : vector<2x32xf32>, vector<2x32xf32> -> vector<4x32xf32>
    %565 = arith.mulf %555, %564 : vector<4x32xf32>
    %566 = arith.mulf %549, %557 : vector<4x32xf32>
    %567 = arith.addf %565, %566 : vector<4x32xf32>
    %568 = math.tanh %567 : vector<4x32xf32>
    %569 = arith.mulf %563, %568 : vector<4x32xf32>
    %570 = vector.extract_strided_slice %569 {offsets = [0, 0], sizes = [2, 32], strides = [1, 1]} : vector<4x32xf32> to vector<2x32xf32>
    %571 = vector.extract_strided_slice %569 {offsets = [2, 0], sizes = [2, 32], strides = [1, 1]} : vector<4x32xf32> to vector<2x32xf32>
    %572 = vector.extract_strided_slice %567 {offsets = [0, 0], sizes = [2, 32], strides = [1, 1]} : vector<4x32xf32> to vector<2x32xf32>
    %573 = vector.extract_strided_slice %567 {offsets = [2, 0], sizes = [2, 32], strides = [1, 1]} : vector<4x32xf32> to vector<2x32xf32>
    %574 = vector.extract_strided_slice %335 {offsets = [12, 0], sizes = [2, 128], strides = [1, 1]} : vector<16x256xf32> to vector<2x128xf32>
    %575 = vector.extract_strided_slice %335 {offsets = [2, 128], sizes = [2, 128], strides = [1, 1]} : vector<16x256xf32> to vector<2x128xf32>
    %576 = tpu.concatenate %570, %571 in 0 : vector<2x32xf32>, vector<2x32xf32> -> vector<4x32xf32>
    %cst_78 = arith.constant dense<0.000000e+00> : vector<4x256xf32>
    %577 = tpu.matmul %576, %331, %cst_78 {dimension_numbers = #tpu.dot_dimension_numbers<[1], [0], [0], [1], [0, 0, 1, 1], [], []>} : vector<4x32xf32>, vector<32x256xf32>, vector<4x256xf32> -> vector<4x256xf32>
    %578 = tpu.concatenate %574, %575 in 0 : vector<2x128xf32>, vector<2x128xf32> -> vector<4x128xf32>
    %579 = vector.extract_strided_slice %577 {offsets = [0, 0], sizes = [2, 128], strides = [1, 1]} : vector<4x256xf32> to vector<2x128xf32>
    %580 = vector.extract_strided_slice %577 {offsets = [2, 128], sizes = [2, 128], strides = [1, 1]} : vector<4x256xf32> to vector<2x128xf32>
    %581 = tpu.concatenate %579, %580 in 0 : vector<2x128xf32>, vector<2x128xf32> -> vector<4x128xf32>
    %582 = arith.addf %578, %581 : vector<4x128xf32>
    %583 = vector.extract_strided_slice %582 {offsets = [0, 0], sizes = [4, 32], strides = [1, 1]} : vector<4x128xf32> to vector<4x32xf32>
    %584 = arith.negf %583 : vector<4x32xf32>
    %585 = math.exp %584 : vector<4x32xf32>
    %cst_79 = arith.constant 1.000000e+00 : f32
    %586 = vector.broadcast %cst_79 : f32 to vector<4x32xf32>
    %587 = arith.addf %586, %585 : vector<4x32xf32>
    %588 = arith.divf %586, %587 : vector<4x32xf32>
    %589 = vector.extract_strided_slice %582 {offsets = [0, 32], sizes = [4, 32], strides = [1, 1]} : vector<4x128xf32> to vector<4x32xf32>
    %590 = arith.negf %589 : vector<4x32xf32>
    %591 = math.exp %590 : vector<4x32xf32>
    %cst_80 = arith.constant 1.000000e+00 : f32
    %592 = vector.broadcast %cst_80 : f32 to vector<4x32xf32>
    %593 = arith.addf %592, %591 : vector<4x32xf32>
    %594 = arith.divf %592, %593 : vector<4x32xf32>
    %595 = vector.extract_strided_slice %582 {offsets = [0, 64], sizes = [4, 32], strides = [1, 1]} : vector<4x128xf32> to vector<4x32xf32>
    %596 = math.tanh %595 : vector<4x32xf32>
    %597 = vector.extract_strided_slice %582 {offsets = [0, 96], sizes = [4, 32], strides = [1, 1]} : vector<4x128xf32> to vector<4x32xf32>
    %598 = arith.negf %597 : vector<4x32xf32>
    %599 = math.exp %598 : vector<4x32xf32>
    %cst_81 = arith.constant 1.000000e+00 : f32
    %600 = vector.broadcast %cst_81 : f32 to vector<4x32xf32>
    %601 = arith.addf %600, %599 : vector<4x32xf32>
    %602 = arith.divf %600, %601 : vector<4x32xf32>
    %603 = tpu.concatenate %572, %573 in 0 : vector<2x32xf32>, vector<2x32xf32> -> vector<4x32xf32>
    %604 = arith.mulf %594, %603 : vector<4x32xf32>
    %605 = arith.mulf %588, %596 : vector<4x32xf32>
    %606 = arith.addf %604, %605 : vector<4x32xf32>
    %607 = math.tanh %606 : vector<4x32xf32>
    %608 = arith.mulf %602, %607 : vector<4x32xf32>
    %609 = vector.extract_strided_slice %608 {offsets = [0, 0], sizes = [2, 32], strides = [1, 1]} : vector<4x32xf32> to vector<2x32xf32>
    %610 = vector.extract_strided_slice %608 {offsets = [2, 0], sizes = [2, 32], strides = [1, 1]} : vector<4x32xf32> to vector<2x32xf32>
    %611 = vector.extract_strided_slice %606 {offsets = [0, 0], sizes = [2, 32], strides = [1, 1]} : vector<4x32xf32> to vector<2x32xf32>
    %612 = vector.extract_strided_slice %606 {offsets = [2, 0], sizes = [2, 32], strides = [1, 1]} : vector<4x32xf32> to vector<2x32xf32>
    %613 = vector.extract_strided_slice %335 {offsets = [14, 0], sizes = [2, 128], strides = [1, 1]} : vector<16x256xf32> to vector<2x128xf32>
    %614 = vector.extract_strided_slice %335 {offsets = [0, 128], sizes = [2, 128], strides = [1, 1]} : vector<16x256xf32> to vector<2x128xf32>
    %615 = tpu.concatenate %609, %610 in 0 : vector<2x32xf32>, vector<2x32xf32> -> vector<4x32xf32>
    %cst_82 = arith.constant dense<0.000000e+00> : vector<4x256xf32>
    %616 = tpu.matmul %615, %331, %cst_82 {dimension_numbers = #tpu.dot_dimension_numbers<[1], [0], [0], [1], [0, 0, 1, 1], [], []>} : vector<4x32xf32>, vector<32x256xf32>, vector<4x256xf32> -> vector<4x256xf32>
    %617 = tpu.concatenate %613, %614 in 0 : vector<2x128xf32>, vector<2x128xf32> -> vector<4x128xf32>
    %618 = vector.extract_strided_slice %616 {offsets = [0, 0], sizes = [2, 128], strides = [1, 1]} : vector<4x256xf32> to vector<2x128xf32>
    %619 = vector.extract_strided_slice %616 {offsets = [2, 128], sizes = [2, 128], strides = [1, 1]} : vector<4x256xf32> to vector<2x128xf32>
    %620 = tpu.concatenate %618, %619 in 0 : vector<2x128xf32>, vector<2x128xf32> -> vector<4x128xf32>
    %621 = arith.addf %617, %620 : vector<4x128xf32>
    %622 = vector.extract_strided_slice %621 {offsets = [0, 0], sizes = [4, 32], strides = [1, 1]} : vector<4x128xf32> to vector<4x32xf32>
    %623 = arith.negf %622 : vector<4x32xf32>
    %624 = math.exp %623 : vector<4x32xf32>
    %cst_83 = arith.constant 1.000000e+00 : f32
    %625 = vector.broadcast %cst_83 : f32 to vector<4x32xf32>
    %626 = arith.addf %625, %624 : vector<4x32xf32>
    %627 = arith.divf %625, %626 : vector<4x32xf32>
    %628 = vector.extract_strided_slice %621 {offsets = [0, 32], sizes = [4, 32], strides = [1, 1]} : vector<4x128xf32> to vector<4x32xf32>
    %629 = arith.negf %628 : vector<4x32xf32>
    %630 = math.exp %629 : vector<4x32xf32>
    %cst_84 = arith.constant 1.000000e+00 : f32
    %631 = vector.broadcast %cst_84 : f32 to vector<4x32xf32>
    %632 = arith.addf %631, %630 : vector<4x32xf32>
    %633 = arith.divf %631, %632 : vector<4x32xf32>
    %634 = vector.extract_strided_slice %621 {offsets = [0, 64], sizes = [4, 32], strides = [1, 1]} : vector<4x128xf32> to vector<4x32xf32>
    %635 = math.tanh %634 : vector<4x32xf32>
    %636 = vector.extract_strided_slice %621 {offsets = [0, 96], sizes = [4, 32], strides = [1, 1]} : vector<4x128xf32> to vector<4x32xf32>
    %637 = arith.negf %636 : vector<4x32xf32>
    %638 = math.exp %637 : vector<4x32xf32>
    %cst_85 = arith.constant 1.000000e+00 : f32
    %639 = vector.broadcast %cst_85 : f32 to vector<4x32xf32>
    %640 = arith.addf %639, %638 : vector<4x32xf32>
    %641 = arith.divf %639, %640 : vector<4x32xf32>
    %642 = tpu.concatenate %611, %612 in 0 : vector<2x32xf32>, vector<2x32xf32> -> vector<4x32xf32>
    %643 = arith.mulf %633, %642 : vector<4x32xf32>
    %644 = arith.mulf %627, %635 : vector<4x32xf32>
    %645 = arith.addf %643, %644 : vector<4x32xf32>
    %646 = math.tanh %645 : vector<4x32xf32>
    %647 = arith.mulf %641, %646 : vector<4x32xf32>
    %648 = vector.extract_strided_slice %647 {offsets = [0, 0], sizes = [2, 32], strides = [1, 1]} : vector<4x32xf32> to vector<2x32xf32>
    %649 = vector.extract_strided_slice %647 {offsets = [2, 0], sizes = [2, 32], strides = [1, 1]} : vector<4x32xf32> to vector<2x32xf32>
    %650 = tpu.concatenate %375, %649 in 1 : vector<2x32xf32>, vector<2x32xf32> -> vector<2x64xf32>
    %651 = tpu.concatenate %414, %610 in 1 : vector<2x32xf32>, vector<2x32xf32> -> vector<2x64xf32>
    %652 = tpu.concatenate %453, %571 in 1 : vector<2x32xf32>, vector<2x32xf32> -> vector<2x64xf32>
    %653 = tpu.concatenate %492, %532 in 1 : vector<2x32xf32>, vector<2x32xf32> -> vector<2x64xf32>
    %654 = tpu.concatenate %531, %493 in 1 : vector<2x32xf32>, vector<2x32xf32> -> vector<2x64xf32>
    %655 = tpu.concatenate %570, %454 in 1 : vector<2x32xf32>, vector<2x32xf32> -> vector<2x64xf32>
    %656 = tpu.concatenate %609, %415 in 1 : vector<2x32xf32>, vector<2x32xf32> -> vector<2x64xf32>
    %657 = tpu.concatenate %648, %376 in 1 : vector<2x32xf32>, vector<2x32xf32> -> vector<2x64xf32>
    %658 = tpu.concatenate %650, %651, %652, %653, %654, %655, %656, %657 in 0 : vector<2x64xf32>, vector<2x64xf32>, vector<2x64xf32>, vector<2x64xf32>, vector<2x64xf32>, vector<2x64xf32>, vector<2x64xf32>, vector<2x64xf32> -> vector<16x64xf32>
    %659 = vector.extract_strided_slice %658 {offsets = [14, 0], sizes = [2, 64], strides = [1, 1]} : vector<16x64xf32> to vector<2x64xf32>
    %c0_86 = arith.constant 0 : index
    %c0_87 = arith.constant 0 : index
    %660 = vector.load %arg8[%c0_86, %c0_87] : memref<64x10xf32, #tpu.memory_space<vmem>>, vector<64x10xf32>
    %cst_88 = arith.constant dense<0.000000e+00> : vector<2x10xf32>
    %661 = tpu.matmul %659, %660, %cst_88 {dimension_numbers = #tpu.dot_dimension_numbers<[1], [0], [0], [1], [0, 0, 1, 1], [], []>} : vector<2x64xf32>, vector<64x10xf32>, vector<2x10xf32> -> vector<2x10xf32>
    %c0_89 = arith.constant 0 : index
    %c0_90 = arith.constant 0 : index
    %662 = vector.load %arg9[%c0_89, %c0_90] : memref<1x10xf32, #tpu.memory_space<vmem>>, vector<1x10xf32>
    %663 = vector.broadcast %662 : vector<1x10xf32> to vector<2x10xf32>
    %664 = arith.addf %661, %663 : vector<2x10xf32>
    %c0_91 = arith.constant 0 : index
    %c0_92 = arith.constant 0 : index
    %665 = vector.load %arg10[%c0_91, %c0_92] : memref<2x10xf32, #tpu.memory_space<vmem>>, vector<2x10xf32>
    tpu.vector_store %arg10[%c0_91, %c0_92], %664 {strides = array<i32>} : memref<2x10xf32, #tpu.memory_space<vmem>>, vector<2x10xf32>,
    return
  }
  func.func @transform_0(%arg0: i32) -> (i32, i32) {
    %c0_i32 = arith.constant 0 : i32
    %c0_i32_0 = arith.constant 0 : i32
    %c0_i32_1 = arith.constant 0 : i32
    return %c0_i32, %c0_i32_0 : i32, i32
  }
  func.func @transform_1(%arg0: i32) -> (i32, i32) {
    %c0_i32 = arith.constant 0 : i32
    %c0_i32_0 = arith.constant 0 : i32
    %c0_i32_1 = arith.constant 0 : i32
    return %c0_i32, %c0_i32_0 : i32, i32
  }
  func.func @transform_2(%arg0: i32) -> (i32, i32) {
    %c0_i32 = arith.constant 0 : i32
    %c0_i32_0 = arith.constant 0 : i32
    %c0_i32_1 = arith.constant 0 : i32
    return %c0_i32, %c0_i32_0 : i32, i32
  }
  func.func @transform_3(%arg0: i32) -> (i32, i32) {
    %c0_i32 = arith.constant 0 : i32
    %c0_i32_0 = arith.constant 0 : i32
    %c0_i32_1 = arith.constant 0 : i32
    return %c0_i32, %c0_i32_0 : i32, i32
  }
  func.func @transform_4(%arg0: i32) -> (i32, i32) {
    %c0_i32 = arith.constant 0 : i32
    %c0_i32_0 = arith.constant 0 : i32
    %c0_i32_1 = arith.constant 0 : i32
    return %c0_i32, %c0_i32_0 : i32, i32
  }
  func.func @transform_5(%arg0: i32) -> (i32, i32) {
    %c0_i32 = arith.constant 0 : i32
    %c0_i32_0 = arith.constant 0 : i32
    %c0_i32_1 = arith.constant 0 : i32
    return %c0_i32, %c0_i32_0 : i32, i32
  }
  func.func @transform_6(%arg0: i32) -> (i32, i32) {
    %c0_i32 = arith.constant 0 : i32
    %c0_i32_0 = arith.constant 0 : i32
    %c0_i32_1 = arith.constant 0 : i32
    return %c0_i32, %c0_i32_0 : i32, i32
  }
  func.func @transform_7(%arg0: i32) -> (i32, i32) {
    %c0_i32 = arith.constant 0 : i32
    %c0_i32_0 = arith.constant 0 : i32
    %c0_i32_1 = arith.constant 0 : i32
    return %c0_i32, %c0_i32_0 : i32, i32
  }
  func.func @transform_8(%arg0: i32) -> (i32, i32) {
    %c0_i32 = arith.constant 0 : i32
    %c0_i32_0 = arith.constant 0 : i32
    %c0_i32_1 = arith.constant 0 : i32
    return %c0_i32, %c0_i32_0 : i32, i32
  }
  func.func @transform_9(%arg0: i32) -> (i32, i32) {
    %c0_i32 = arith.constant 0 : i32
    %c0_i32_0 = arith.constant 0 : i32
    %c0_i32_1 = arith.constant 0 : i32
    return %c0_i32, %c0_i32_0 : i32, i32
  }
}

</mosaic_0001>

<bundles_post_ra>
// kernel: tpu_custom_call.1
= control target key start
LH: loop header
LB: loop body
LE: loop exit
PB: predicated region body
PF: predicated region fallthrough
CT: control target
= control target key end

     0   :  { %14 = vsyncpa [#allocation3], 0  ;;  %s2725_s0 = inlined_call_operand.vmem [shape: f32[16,28], index: 0, kind: input, shape index: {}]   ;;  %s2726_s1 = inlined_call_operand.vmem [shape: f32[28,256], index: 1, kind: input, shape index: {}]   ;;  %s2727_s2 = inlined_call_operand.hbm [shape: f32[32,256], index: 2, kind: input, shape index: {}]   ;;  %s2728_s3 = inlined_call_operand.vmem [shape: f32[1,256], index: 3, kind: input, shape index: {}]   ;;  %s2729_s4 = inlined_call_operand.hbm [shape: f32[64,256], index: 4, kind: input, shape index: {}]   ;;  %s2730_s5 = inlined_call_operand.hbm [shape: f32[32,256], index: 5, kind: input, shape index: {}]   ;;  %s2731_s6 = inlined_call_operand.vmem [shape: f32[1,256], index: 6, kind: input, shape index: {}]   ;;  %s2732_s7 = inlined_call_operand.vmem [shape: f32[64,10], index: 7, kind: input, shape index: {}]   ;;  %s2733_s8 = inlined_call_operand.vmem [shape: f32[1,10], index: 8, kind: input, shape index: {}]   ;;  %s2734_s9 = inlined_call_operand.hbm [shape: f32[2,10], index: 9, kind: output, shape index: {}]  }
   0x1   :  { %15 = vsyncpa [#allocation6], 0 }
   0x2   :  { %16 = vsyncpa [#allocation4], 0  ;;  %s40_s11 = sshll.u32 %s2729_s4, 4  ;;  %s2127_s12 = smov [#allocation5]   ;;  %s41_s11 = int_to_ptr.hbm [resolvable:$true] %s40_s11 }
   0x3   :  { %s42_s13 = sshll.u32 %s2127_s12, 4  ;;  %s25_s16 = sshll.u32 %s2727_s2, 4  ;;  %s43_s13 = int_to_ptr.vmem [resolvable:$true] %s42_s13  ;;  %s26_s16 = int_to_ptr.hbm [resolvable:$true] %s25_s16 }
   0x4   :  { %s2128_s17 = smov 256   ;;  %s2129_s18 = smov 16  }
   0x5   :  { %48 = dma.hbm_to_vmem [thread:$0]  %s41_s11, 2048, %s43_s13, [#allocation6], %s2128_s17, %s2128_s17, %s2129_s18  }
   0x6   :  { %s2130_s19 = smov [#allocation2]   ;;  %s53_s23 = sshll.u32 %s2730_s5, 4  ;;  %s54_s23 = int_to_ptr.hbm [resolvable:$true] %s53_s23 }
   0x7   :  { %s27_s20 = sshll.u32 %s2130_s19, 4  ;;  %s2131_s4 = smov [#allocation7]   ;;  %s28_s20 = int_to_ptr.vmem [resolvable:$true] %s27_s20 }
   0x8   :  { %33 = dma.hbm_to_vmem [thread:$0]  %s26_s16, 1024, %s28_s20, [#allocation3], %s2128_s17, %s2128_s17, %s2129_s18  }
   0x9   :  { %s55_s24 = sshll.u32 %s2131_s4, 4  ;;  %s56_s24 = int_to_ptr.vmem [resolvable:$true] %s55_s24 }
   0xa   :  { %61 = dma.hbm_to_vmem [thread:$0]  %s54_s23, 1024, %s56_s24, [#allocation6], %s2128_s17, %s2128_s17, %s2129_s18  }
   0xb   :  { %2121 = dma.done.wait [#allocation3], 1024  }
   0xc   :  { %2122 = vsyncadd [#allocation3], 4294966272 }
   0xd   :  { %2123 = dma.done.wait [#allocation6], 3072  }
   0xe   :  { %2124 = vsyncadd [#allocation6], 4294964224  ;;  %vm111_vm0 = vcmask 1043456   ;;  %v88_v0 = vld [vmem:[%s2726_s1 + $0x30] sm:$0xf]  ;;  %v86_v2 = vld [vmem:[%s2726_s1 + $0x20] sm:$0xff] }
   0xf   :  { %v2198_v1 = vld [vmem:[#allocation2 + $0x30] sm:$0xff]  ;;  %1832 = vmatpush.msk.msra.mxu0 %vm111_vm0, %v88_v0  ;;  %v89_v3 = vld [vmem:[%s2726_s1 + $0x38] sm:$0xf]  ;;  %v2208_v4 = vld [vmem:[#allocation2 + $0x20] sm:$0xff]  ;;  %vm104_vm1 = vcmask 228352   ;;  %v2132_v14 = vmov 0.0  }
  0x10   :  { %180 = vmatpush.msra.mxu3 %v2198_v1  ;;  %1835 = vmatpush.msk.msra.mxu1 %vm111_vm0, %v89_v3  ;;  %v84_v5 = vld [vmem:[%s2726_s1 + $0x10] sm:$0xff]  ;;  %v87_v6 = vld [vmem:[%s2726_s1 + $0x28] sm:$0xff]  ;;  %v85_v8 = vld [vmem:[%s2726_s1 + $0x18] sm:$0xff]  ;;  %vm211_vm2 = vcmask 1041408   ;;  %s2134_s22 = smov 32   ;;  %vm164_vm7 = vcmask 261120  }
  0x11   :  { %v2217_v7 = vld [vmem:[#allocation2 + $0x10] sm:$0xff]  ;;  %272 = vmatpush.msra.mxu2 %v2198_v1  ;;  %131 = vmatpush.msra.mxu0 %v86_v2  ;;  %v82_v9 = vld [vmem:[%s2726_s1] sm:$0xff]  ;;  %v2234_v12 = vld [vmem:[#allocation2 + $0x38] sm:$0xff]  ;;  %s2135_s17 = smov [#allocation8]   ;;  %s1821_s20 = sshll.u32 %s2734_s9, 4  ;;  %s1822_s20 = int_to_ptr.hbm [resolvable:$true] %s1821_s20 }
  0x12   :  { %181 = vmatpush.msra.mxu3 %v2208_v4  ;;  %154 = vmatpush.msra.mxu1 %v87_v6  ;;  %v2227_v10 = vld [vmem:[#allocation2] sm:$0xff]  ;;  %v83_v13 = vld [vmem:[%s2726_s1 + $0x8] sm:$0xff]  ;;  %v2247_v16 = vld [vmem:[#allocation2 + $0x18] sm:$0xff]  ;;  %s1819_s18 = sshll.u32 %s2135_s17, 4  ;;  %s1820_s18 = int_to_ptr.vmem [resolvable:$true] %s1819_s18 }
  0x13   :  { %273 = vmatpush.msra.mxu2 %v2208_v4  ;;  %132 = vmatpush.msra.mxu0 %v84_v5  ;;  %v80_v11 = vld [vmem:[%s2725_s0] sm:$0xff]  ;;  %v2243_v15 = vld [vmem:[#allocation2 + $0x28] sm:$0xff] }
  0x14   :  { %182 = vmatpush.msra.mxu3 %v2217_v7  ;;  %155 = vmatpush.msra.mxu1 %v85_v8  ;;  %v2252_v17 = vld [vmem:[#allocation2 + $0x8] sm:$0xff]  ;;  %v98_v19 = vld [vmem:[%s2728_s3] sm:$0x3]  ;;  %s2133_s3 = smov 64  }
  0x15   :  { %274 = vmatpush.msra.mxu2 %v2217_v7  ;;  %133 = vmatpush.msra.mxu0 %v82_v9  ;;  %v81_v18 = vld [vmem:[%s2725_s0 + $0x8] sm:$0xff]  ;;  %v101_v20 = vperm.slane %v98_v19, 1  ;;  %v100_v22 = vperm.slane %v98_v19, 0 }
  0x16   :  { %183 = vmatpush.msra.mxu3 %v2227_v10  ;;  %1833 = vmatmul.msk.f32.vlgmr.msra.gmra.mxu0 %vm104_vm1, %v80_v11 }
  0x17   :  { %184 = vmatmul.f32.vlgmr.msra.gmra.mxu3 %v2132_v14  ;;  %156 = vmatpush.msra.mxu1 %v83_v13 }
  0x18   :  { %200 = vmatpush.msrb.mxu3 %v2234_v12  ;;  %1836 = vmatmul.msk.f32.vlgmr.msra.gmra.mxu1 %vm104_vm1, %v80_v11 }
  0x19   :  { %275 = vmatpush.msra.mxu2 %v2227_v10  ;;  %362 = vmatpush.msrb.mxu0 %v2198_v1 }
  0x1a   :  { %201 = vmatpush.msrb.mxu3 %v2243_v15  ;;  %382 = vmatpush.msrb.mxu1 %v2234_v12 }
  0x1b   :  { %449 = vmatpush.msrb.mxu2 %v2198_v1  ;;  %363 = vmatpush.msrb.mxu0 %v2208_v4 }
  0x1c   :  { %202 = vmatpush.msrb.mxu3 %v2247_v16  ;;  %383 = vmatpush.msrb.mxu1 %v2243_v15 }
  0x1d   :  { %450 = vmatpush.msrb.mxu2 %v2208_v4  ;;  %364 = vmatpush.msrb.mxu0 %v2217_v7 }
  0x1e   :  { %203 = vmatpush.msrb.mxu3 %v2252_v17  ;;  %1834 = vmatmul.msk.f32.gmra.mxu0 %vm104_vm1, %v81_v18 }
  0x1f   :  { %204 = vmatmul.f32.vlgmr.msrb.gmra.mxu3 %v2132_v14  ;;  %384 = vmatpush.msrb.mxu1 %v2247_v16 }
  0x20   :  { %292 = vmatpush.msra.mxu3 %v2234_v12  ;;  %1837 = vmatmul.msk.f32.gmra.mxu1 %vm104_vm1, %v81_v18 }
  0x21   :  { %365 = vmatpush.msrb.mxu0 %v2227_v10  ;;  %385 = vmatpush.msrb.mxu1 %v2252_v17 }
  0x22   :  { %293 = vmatpush.msra.mxu3 %v2243_v15  ;;  %451 = vmatpush.msrb.mxu2 %v2217_v7 }
  0x23   :  { %538 = vmatpush.msra.mxu0 %v2198_v1  ;;  %558 = vmatpush.msra.mxu1 %v2234_v12 }
  0x24   :  { %294 = vmatpush.msra.mxu3 %v2247_v16  ;;  %452 = vmatpush.msrb.mxu2 %v2227_v10 }
  0x25   :  { %539 = vmatpush.msra.mxu0 %v2208_v4  ;;  %559 = vmatpush.msra.mxu1 %v2243_v15 }
  0x26   :  { %295 = vmatpush.msra.mxu3 %v2252_v17 }
  0x27   :  { %540 = vmatpush.msra.mxu0 %v2217_v7  ;;  %560 = vmatpush.msra.mxu1 %v2247_v16 }
  0x28   :  { %469 = vmatpush.msrb.mxu3 %v2234_v12 }
  0x29   :  { %541 = vmatpush.msra.mxu0 %v2227_v10  ;;  %561 = vmatpush.msra.mxu1 %v2252_v17 }
  0x2a   :  { %470 = vmatpush.msrb.mxu3 %v2243_v15 }
  0x2c   :  { %471 = vmatpush.msrb.mxu3 %v2247_v16 }
  0x2e   :  { %472 = vmatpush.msrb.mxu3 %v2252_v17 }
  0x93   :  { %v135_v21 = vpop.f32.mrf.mxu0 }
  0x94   :  { %v136_v25 = vadd.f32 %v135_v21, %v100_v22 }
  0x95   :  { %v158_v23 = vpop.f32.mrf.mxu1 }
  0x96   :  { %v159_v24 = vadd.f32 %v158_v23, %v101_v20  ;;  %v390_v29 = vrot.slane %v136_v25, 4  ;;  %v301_v32 = vrot.slane %v136_v25, 2  ;;  %v477_v33 = vrot.slane %v136_v25, 6 }
  0x98   :  { %v567_v30 = vrot.slane %v159_v24, 4  ;;  %v657_v38 = vrot.slane %v159_v24, 2  ;;  %v833_v40 = vrot.slane %v159_v24, 6 }
  0x9a   :  { %v185_v26 = vpop.f32.mrf.mxu3 }
  0x9b   :  { %v138_v27 = vpop.f32.mrf.mxu0 }
  0x9c   :  { %v139_v28 = vadd.f32 %v138_v27, %v100_v22 }
  0x9d   :  { %v161_v31 = vpop.f32.mrf.mxu1 }
  0x9e   :  { %v162_v34 = vadd.f32 %v161_v31, %v101_v20  ;;  %v2293_v35 = vsel %vm211_vm2, %v139_v28, %v567_v30  ;;  %v655_v36 = vrot.slane %v139_v28, 2  ;;  %v744_v37 = vrot.slane %v139_v28, 4 }
  0x9f   :  { %v831_v39 = vrot.slane %v139_v28, 6 }
  0xa0   :  { %v209_v41 = vrot.slane %v162_v34, 4  ;;  %v303_v42 = vrot.slane %v162_v34, 2  ;;  %v2296_v43 = vsel %vm211_vm2, %v390_v29, %v162_v34  ;;  %v479_v44 = vrot.slane %v162_v34, 6 }
  0xa1   :  { %v2299_v46 = vsel %vm211_vm2, %v655_v36, %v657_v38  ;;  %v2302_v47 = vsel %vm211_vm2, %v744_v37, %v159_v24  ;;  %v2305_v48 = vsel %vm211_vm2, %v831_v39, %v833_v40 }
  0xa2   :  { %v205_v45 = vpop.f32.mrf.mxu3  ;;  %v212_v49 = vsel %vm211_vm2, %v136_v25, %v209_v41  ;;  %v305_v51 = vsel %vm211_vm2, %v301_v32, %v303_v42  ;;  %v2311_v52 = vsel %vm211_vm2, %v477_v33, %v479_v44 }
  0xa3   :  { %v213_v50 = vsel %vm211_vm2, %v185_v26, %v205_v45 }
  0xa4   :  { %v214_v53 = vadd.f32 %v213_v50, %v212_v49 }
  0xa6   :  { %1897 = vtanh.f32 %v214_v53  ;;  %v1838_v55 = vmul.f32 -1.442695, %v214_v53 }
  0xa8   :  { %1899 = vpow2.f32 %v1838_v55 }
  0xac   :  { %v1898_v54 = vpop.eup %1897 }
  0xad   :  { %240 = vrot.lane.b32.xlu0 %v1898_v54, %s2133_s3 }
  0xae   :  { %v1900_v56 = vpop.eup %1899 }
  0xaf   :  { %v218_v57 = vadd.f32 1.0, %v1900_v56 }
  0xb1   :  { %1901 = vrcp.f32 %v218_v57  ;;  %v230_v63 = vand.u32 2147483648, %v218_v57  ;;  %vm224_vm4 = vweird.f32 %v218_v57  ;;  %v228_v0 = vand.u32 2147483647, %v218_v57 }
  0xb3   :  { %v231_v3 = vor.u32 1.1754944e-38, %v230_v63  ;;  %vm229_vm6 = vcmp.eq.f32.partialorder %v228_v0, 8.507059e+37 }
  0xb5   :  { %235 = vrot.lane.b32.xlu0 %v2132_v14, %s2134_s22 }
  0xb7   :  { %v1902_v58 = vpop.eup %1901 }
  0xb8   :  { %v220_v59 = vmul.f32 %v1902_v58, %v218_v57  ;;  %vm225_vm3 = vweird.f32 %v1902_v58 }
  0xb9   :  { %vm226_vm5 = vmor %vm224_vm4, %vm225_vm3 }
  0xba   :  { %v221_v60 = vsub.f32 1.0, %v220_v59 }
  0xbc   :  { %v222_v61 = vmul.f32 %v1902_v58, %v221_v60 }
  0xbe   :  { %v223_v62 = vadd.f32 %v1902_v58, %v222_v61 }
  0xc0   :  { %v227_v2 = vsel %vm226_vm5, %v1902_v58, %v223_v62 }
  0xc1   :  { %v232_v6 = vsel %vm229_vm6, %v231_v3, %v227_v2 }
 0x11f   :  { %v241_v5 = vpop.permute.xlu0 %240 }
 0x120   :  { %v243_v8 = vmul.f32 %v241_v5, %v232_v6 }
 0x122   :  { %245 = vrot.lane.b32.xlu1 %v243_v8, %s2134_s22 }
 0x127   :  { %v2317_v9 = vpop.permute.xlu0 %235 }
 0x128   :  { %v238_v11 = vmul.f32 %v2317_v9, %v232_v6 }
 0x194   :  { %v246_v13 = vpop.permute.xlu1 %245 }
 0x195   :  { %v248_v18 = vadd.f32 %v246_v13, %v238_v11 }
 0x197   :  { %1903 = vtanh.f32 %v248_v18 }
 0x19d   :  { %v1904_v19 = vpop.eup %1903 }
 0x19e   :  { %251 = vrot.lane.b32.xlu1 %v1904_v19, %s2133_s3 }
 0x210   :  { %v252_v20 = vpop.permute.xlu1 %251 }
 0x211   :  { %v2321_v21 = vmul.f32 %v252_v20, %v232_v6 }
 0x213   :  { %256 = vrot.lane.b32.xlu2 %v2321_v21, %s2134_s22 }
 0x26d   :  { %v2325_v22 = vpop.permute.xlu2 %256 }
 0x26e   :  { %1839 = vmatmul.msk.f32.vlgmr.msra.gmra.mxu2 %vm164_vm7, %v2325_v22  ;;  %1840 = vmatmul.msk.f32.vlgmr.msra.gmra.mxu3 %vm164_vm7, %v2325_v22 }
 0x26f   :  { %626 = vmatpush.msra.mxu2 %v2198_v1  ;;  %646 = vmatpush.msra.mxu3 %v2234_v12 }
 0x271   :  { %627 = vmatpush.msra.mxu2 %v2208_v4  ;;  %647 = vmatpush.msra.mxu3 %v2243_v15 }
 0x273   :  { %628 = vmatpush.msra.mxu2 %v2217_v7  ;;  %648 = vmatpush.msra.mxu3 %v2247_v16 }
 0x275   :  { %629 = vmatpush.msra.mxu2 %v2227_v10  ;;  %649 = vmatpush.msra.mxu3 %v2252_v17 }
 0x2f1   :  { %v277_v23 = vpop.f32.mrf.mxu2  ;;  %v297_v24 = vpop.f32.mrf.mxu3 }
 0x2f2   :  { %v306_v25 = vsel %vm211_vm2, %v277_v23, %v297_v24 }
 0x2f3   :  { %v307_v26 = vadd.f32 %v306_v25, %v305_v51 }
 0x2f5   :  { %1905 = vtanh.f32 %v307_v26  ;;  %v1841_v28 = vmul.f32 -1.442695, %v307_v26 }
 0x2f7   :  { %1907 = vpow2.f32 %v1841_v28 }
 0x2fb   :  { %v1906_v27 = vpop.eup %1905 }
 0x2fc   :  { %330 = vrot.lane.b32.xlu2 %v1906_v27, %s2133_s3 }
 0x2fd   :  { %v1908_v29 = vpop.eup %1907 }
 0x2fe   :  { %v311_v30 = vadd.f32 1.0, %v1908_v29 }
 0x300   :  { %1909 = vrcp.f32 %v311_v30  ;;  %v323_v37 = vand.u32 2147483648, %v311_v30  ;;  %vm317_vm9 = vweird.f32 %v311_v30  ;;  %v321_v38 = vand.u32 2147483647, %v311_v30 }
 0x302   :  { %v324_v40 = vor.u32 1.1754944e-38, %v323_v37  ;;  %vm322_vm11 = vcmp.eq.f32.partialorder %v321_v38, 8.507059e+37 }
 0x306   :  { %v1910_v31 = vpop.eup %1909 }
 0x307   :  { %v313_v32 = vmul.f32 %v1910_v31, %v311_v30  ;;  %vm318_vm8 = vweird.f32 %v1910_v31 }
 0x308   :  { %vm319_vm10 = vmor %vm317_vm9, %vm318_vm8 }
 0x309   :  { %v314_v33 = vsub.f32 1.0, %v313_v32 }
 0x30b   :  { %v315_v34 = vmul.f32 %v1910_v31, %v314_v33 }
 0x30d   :  { %v316_v36 = vadd.f32 %v1910_v31, %v315_v34 }
 0x30f   :  { %v320_v39 = vsel %vm319_vm10, %v1910_v31, %v316_v36 }
 0x310   :  { %v325_v42 = vsel %vm322_vm11, %v324_v40, %v320_v39 }
 0x311   :  { %v328_v45 = vmul.f32 %v325_v42, %v248_v18 }
 0x356   :  { %v331_v41 = vpop.permute.xlu2 %330 }
 0x357   :  { %v333_v44 = vmul.f32 %v331_v41, %v325_v42 }
 0x359   :  { %335 = vrot.lane.b32.xlu0 %v333_v44, %s2134_s22 }
 0x3cb   :  { %v336_v49 = vpop.permute.xlu0 %335 }
 0x3cc   :  { %v338_v50 = vadd.f32 %v336_v49, %v328_v45 }
 0x3ce   :  { %1911 = vtanh.f32 %v338_v50 }
 0x3d4   :  { %v1912_v51 = vpop.eup %1911 }
 0x3d5   :  { %341 = vrot.lane.b32.xlu1 %v1912_v51, %s2133_s3 }
 0x447   :  { %v342_v53 = vpop.permute.xlu1 %341 }
 0x448   :  { %v2343_v54 = vmul.f32 %v342_v53, %v325_v42 }
 0x44a   :  { %346 = vrot.lane.b32.xlu2 %v2343_v54, %s2134_s22 }
 0x4a4   :  { %v2347_v55 = vpop.permute.xlu2 %346 }
 0x4a5   :  { %1842 = vmatmul.msk.f32.vlgmr.msrb.gmra.mxu0 %vm164_vm7, %v2347_v55  ;;  %1843 = vmatmul.msk.f32.vlgmr.msrb.gmra.mxu1 %vm164_vm7, %v2347_v55 }
 0x4a6   :  { %716 = vmatpush.msrb.mxu0 %v2198_v1  ;;  %736 = vmatpush.msrb.mxu1 %v2234_v12 }
 0x4a8   :  { %717 = vmatpush.msrb.mxu0 %v2208_v4  ;;  %737 = vmatpush.msrb.mxu1 %v2243_v15 }
 0x4aa   :  { %718 = vmatpush.msrb.mxu0 %v2217_v7  ;;  %738 = vmatpush.msrb.mxu1 %v2247_v16 }
 0x4ac   :  { %719 = vmatpush.msrb.mxu0 %v2227_v10  ;;  %739 = vmatpush.msrb.mxu1 %v2252_v17 }
 0x522   :  { %v367_v56 = vpop.f32.mrf.mxu0  ;;  %v387_v57 = vpop.f32.mrf.mxu1 }
 0x523   :  { %v393_v58 = vsel %vm211_vm2, %v367_v56, %v387_v57 }
 0x524   :  { %v394_v59 = vadd.f32 %v393_v58, %v2296_v43 }
 0x526   :  { %1913 = vtanh.f32 %v394_v59  ;;  %v1844_v61 = vmul.f32 -1.442695, %v394_v59 }
 0x528   :  { %1915 = vpow2.f32 %v1844_v61 }
 0x52c   :  { %v1914_v60 = vpop.eup %1913 }
 0x52d   :  { %417 = vrot.lane.b32.xlu0 %v1914_v60, %s2133_s3 }
 0x52e   :  { %v1916_v62 = vpop.eup %1915 }
 0x52f   :  { %v398_v63 = vadd.f32 1.0, %v1916_v62 }
 0x531   :  { %1917 = vrcp.f32 %v398_v63  ;;  %v410_v8 = vand.u32 2147483648, %v398_v63  ;;  %vm404_vm13 = vweird.f32 %v398_v63  ;;  %v408_v11 = vand.u32 2147483647, %v398_v63 }
 0x533   :  { %v411_v13 = vor.u32 1.1754944e-38, %v410_v8  ;;  %vm409_vm15 = vcmp.eq.f32.partialorder %v408_v11, 8.507059e+37 }
 0x537   :  { %v1918_v0 = vpop.eup %1917 }
 0x538   :  { %v400_v2 = vmul.f32 %v1918_v0, %v398_v63  ;;  %vm405_vm12 = vweird.f32 %v1918_v0 }
 0x539   :  { %vm406_vm14 = vmor %vm404_vm13, %vm405_vm12 }
 0x53a   :  { %v401_v3 = vsub.f32 1.0, %v400_v2 }
 0x53c   :  { %v402_v5 = vmul.f32 %v1918_v0, %v401_v3 }
 0x53e   :  { %v403_v6 = vadd.f32 %v1918_v0, %v402_v5 }
 0x540   :  { %v407_v43 = vsel %vm406_vm14, %v1918_v0, %v403_v6 }
 0x541   :  { %v412_v19 = vsel %vm409_vm15, %v411_v13, %v407_v43 }
 0x542   :  { %v415_v23 = vmul.f32 %v412_v19, %v338_v50 }
 0x59f   :  { %v418_v18 = vpop.permute.xlu0 %417 }
 0x5a0   :  { %v420_v20 = vmul.f32 %v418_v18, %v412_v19 }
 0x5a2   :  { %422 = vrot.lane.b32.xlu1 %v420_v20, %s2134_s22 }
 0x614   :  { %v423_v24 = vpop.permute.xlu1 %422 }
 0x615   :  { %v425_v25 = vadd.f32 %v423_v24, %v415_v23 }
 0x617   :  { %1919 = vtanh.f32 %v425_v25 }
 0x61d   :  { %v1920_v26 = vpop.eup %1919 }
 0x61e   :  { %428 = vrot.lane.b32.xlu2 %v1920_v26, %s2133_s3 }
 0x678   :  { %v429_v27 = vpop.permute.xlu2 %428 }
 0x679   :  { %v2366_v28 = vmul.f32 %v429_v27, %v412_v19 }
 0x67b   :  { %433 = vrot.lane.b32.xlu0 %v2366_v28, %s2134_s22 }
 0x6ed   :  { %v2370_v29 = vpop.permute.xlu0 %433 }
 0x6ee   :  { %1845 = vmatmul.msk.f32.vlgmr.msrb.gmra.mxu2 %vm164_vm7, %v2370_v29  ;;  %1846 = vmatmul.msk.f32.vlgmr.msrb.gmra.mxu3 %vm164_vm7, %v2370_v29 }
 0x6ef   :  { %803 = vmatpush.msrb.mxu2 %v2198_v1  ;;  %823 = vmatpush.msrb.mxu3 %v2234_v12 }
 0x6f1   :  { %804 = vmatpush.msrb.mxu2 %v2208_v4  ;;  %824 = vmatpush.msrb.mxu3 %v2243_v15 }
 0x6f3   :  { %805 = vmatpush.msrb.mxu2 %v2217_v7  ;;  %825 = vmatpush.msrb.mxu3 %v2247_v16 }
 0x6f5   :  { %806 = vmatpush.msrb.mxu2 %v2227_v10  ;;  %826 = vmatpush.msrb.mxu3 %v2252_v17 }
 0x771   :  { %v454_v30 = vpop.f32.mrf.mxu2  ;;  %v474_v31 = vpop.f32.mrf.mxu3 }
 0x772   :  { %v482_v32 = vsel %vm211_vm2, %v454_v30, %v474_v31 }
 0x773   :  { %v483_v1 = vadd.f32 %v482_v32, %v2311_v52 }
 0x775   :  { %1921 = vtanh.f32 %v483_v1  ;;  %v1847_v4 = vmul.f32 -1.442695, %v483_v1 }
 0x777   :  { %1923 = vpow2.f32 %v1847_v4 }
 0x77b   :  { %v1922_v12 = vpop.eup %1921 }
 0x77c   :  { %506 = vrot.lane.b32.xlu1 %v1922_v12, %s2133_s3 }
 0x77d   :  { %v1924_v15 = vpop.eup %1923 }
 0x77e   :  { %v487_v7 = vadd.f32 1.0, %v1924_v15 }
 0x780   :  { %1925 = vrcp.f32 %v487_v7  ;;  %v499_v36 = vand.u32 2147483648, %v487_v7  ;;  %vm493_vm3 = vweird.f32 %v487_v7  ;;  %v497_v37 = vand.u32 2147483647, %v487_v7 }
 0x782   :  { %v500_v38 = vor.u32 1.1754944e-38, %v499_v36  ;;  %vm498_vm5 = vcmp.eq.f32.partialorder %v497_v37, 8.507059e+37 }
 0x786   :  { %v1926_v16 = vpop.eup %1925 }
 0x787   :  { %v489_v33 = vmul.f32 %v1926_v16, %v487_v7  ;;  %vm494_vm1 = vweird.f32 %v1926_v16 }
 0x788   :  { %vm495_vm4 = vmor %vm493_vm3, %vm494_vm1 }
 0x789   :  { %v490_v10 = vsub.f32 1.0, %v489_v33 }
 0x78b   :  { %v491_v34 = vmul.f32 %v1926_v16, %v490_v10 }
 0x78d   :  { %v492_v17 = vadd.f32 %v1926_v16, %v491_v34 }
 0x78f   :  { %v496_v52 = vsel %vm495_vm4, %v1926_v16, %v492_v17 }
 0x790   :  { %v501_v40 = vsel %vm498_vm5, %v500_v38, %v496_v52 }
 0x791   :  { %v504_v42 = vmul.f32 %v501_v40, %v425_v25 }
 0x7ee   :  { %v507_v39 = vpop.permute.xlu1 %506 }
 0x7ef   :  { %v509_v41 = vmul.f32 %v507_v39, %v501_v40 }
 0x7f1   :  { %511 = vrot.lane.b32.xlu2 %v509_v41, %s2134_s22 }
 0x84b   :  { %v512_v44 = vpop.permute.xlu2 %511 }
 0x84c   :  { %v514_v45 = vadd.f32 %v512_v44, %v504_v42 }
 0x84e   :  { %1927 = vtanh.f32 %v514_v45 }
 0x854   :  { %v1928_v49 = vpop.eup %1927 }
 0x855   :  { %517 = vrot.lane.b32.xlu0 %v1928_v49, %s2133_s3 }
 0x8c7   :  { %v518_v50 = vpop.permute.xlu0 %517 }
 0x8c8   :  { %v2389_v51 = vmul.f32 %v518_v50, %v501_v40 }
 0x8ca   :  { %522 = vrot.lane.b32.xlu1 %v2389_v51, %s2134_s22 }
 0x93c   :  { %v2393_v53 = vpop.permute.xlu1 %522 }
 0x93d   :  { %1848 = vmatmul.msk.f32.vlgmr.msra.gmra.mxu0 %vm164_vm7, %v2393_v53  ;;  %1849 = vmatmul.msk.f32.vlgmr.msra.gmra.mxu1 %vm164_vm7, %v2393_v53 }
 0x9ba   :  { %v543_v56 = vpop.f32.mrf.mxu0  ;;  %v563_v57 = vpop.f32.mrf.mxu1 }
 0x9bb   :  { %v570_v58 = vsel %vm211_vm2, %v543_v56, %v563_v57 }
 0x9bc   :  { %v571_v59 = vadd.f32 %v570_v58, %v2293_v35 }
 0x9be   :  { %1929 = vtanh.f32 %v571_v59  ;;  %v1850_v61 = vmul.f32 -1.442695, %v571_v59 }
 0x9c0   :  { %1931 = vpow2.f32 %v1850_v61 }
 0x9c4   :  { %v1930_v60 = vpop.eup %1929 }
 0x9c5   :  { %594 = vrot.lane.b32.xlu2 %v1930_v60, %s2133_s3 }
 0x9c6   :  { %v1932_v62 = vpop.eup %1931 }
 0x9c7   :  { %v575_v63 = vadd.f32 1.0, %v1932_v62 }
 0x9c9   :  { %1933 = vrcp.f32 %v575_v63  ;;  %v587_v8 = vand.u32 2147483648, %v575_v63  ;;  %vm581_vm8 = vweird.f32 %v575_v63  ;;  %v585_v11 = vand.u32 2147483647, %v575_v63 }
 0x9cb   :  { %v588_v43 = vor.u32 1.1754944e-38, %v587_v8  ;;  %vm586_vm10 = vcmp.eq.f32.partialorder %v585_v11, 8.507059e+37 }
 0x9cf   :  { %v1934_v0 = vpop.eup %1933 }
 0x9d0   :  { %v577_v2 = vmul.f32 %v1934_v0, %v575_v63  ;;  %vm582_vm6 = vweird.f32 %v1934_v0 }
 0x9d1   :  { %vm583_vm9 = vmor %vm581_vm8, %vm582_vm6 }
 0x9d2   :  { %v578_v3 = vsub.f32 1.0, %v577_v2 }
 0x9d4   :  { %v579_v5 = vmul.f32 %v1934_v0, %v578_v3 }
 0x9d6   :  { %v580_v6 = vadd.f32 %v1934_v0, %v579_v5 }
 0x9d8   :  { %v584_v35 = vsel %vm583_vm9, %v1934_v0, %v580_v6 }
 0x9d9   :  { %v589_v18 = vsel %vm586_vm10, %v588_v43, %v584_v35  ;;  %vm946_vm10 = vcmask 1045504  }
 0x9da   :  { %v592_v20 = vmul.f32 %v589_v18, %v514_v45 }
 0xa1f   :  { %v595_v13 = vpop.permute.xlu2 %594 }
 0xa20   :  { %v597_v19 = vmul.f32 %v595_v13, %v589_v18 }
 0xa22   :  { %599 = vrot.lane.b32.xlu0 %v597_v19, %s2134_s22 }
 0xa94   :  { %v600_v23 = vpop.permute.xlu0 %599 }
 0xa95   :  { %v602_v24 = vadd.f32 %v600_v23, %v592_v20 }
 0xa97   :  { %1935 = vtanh.f32 %v602_v24 }
 0xa9d   :  { %v1936_v25 = vpop.eup %1935 }
 0xa9e   :  { %605 = vrot.lane.b32.xlu1 %v1936_v25, %s2133_s3 }
 0xb10   :  { %v606_v26 = vpop.permute.xlu1 %605 }
 0xb11   :  { %v2404_v27 = vmul.f32 %v606_v26, %v589_v18 }
 0xb13   :  { %610 = vrot.lane.b32.xlu2 %v2404_v27, %s2134_s22 }
 0xb6d   :  { %v2408_v30 = vpop.permute.xlu2 %610 }
 0xb6e   :  { %1851 = vmatmul.msk.f32.vlgmr.msra.gmra.mxu2 %vm164_vm7, %v2408_v30  ;;  %1852 = vmatmul.msk.f32.vlgmr.msra.gmra.mxu3 %vm164_vm7, %v2408_v30 }
 0xbf1   :  { %v631_v31 = vpop.f32.mrf.mxu2  ;;  %v651_v32 = vpop.f32.mrf.mxu3 }
 0xbf2   :  { %v660_v1 = vsel %vm211_vm2, %v631_v31, %v651_v32 }
 0xbf3   :  { %v661_v12 = vadd.f32 %v660_v1, %v2299_v46 }
 0xbf5   :  { %1937 = vtanh.f32 %v661_v12  ;;  %v1853_v15 = vmul.f32 -1.442695, %v661_v12 }
 0xbf7   :  { %1939 = vpow2.f32 %v1853_v15 }
 0xbfb   :  { %v1938_v4 = vpop.eup %1937 }
 0xbfc   :  { %684 = vrot.lane.b32.xlu0 %v1938_v4, %s2133_s3 }
 0xbfd   :  { %v1940_v7 = vpop.eup %1939 }
 0xbfe   :  { %v665_v16 = vadd.f32 1.0, %v1940_v7 }
 0xc00   :  { %1941 = vrcp.f32 %v665_v16  ;;  %v677_v37 = vand.u32 2147483648, %v665_v16  ;;  %vm671_vm12 = vweird.f32 %v665_v16  ;;  %v675_v52 = vand.u32 2147483647, %v665_v16 }
 0xc02   :  { %v678_v38 = vor.u32 1.1754944e-38, %v677_v37  ;;  %vm676_vm14 = vcmp.eq.f32.partialorder %v675_v52, 8.507059e+37 }
 0xc06   :  { %v1942_v33 = vpop.eup %1941 }
 0xc07   :  { %v667_v10 = vmul.f32 %v1942_v33, %v665_v16  ;;  %vm672_vm11 = vweird.f32 %v1942_v33 }
 0xc08   :  { %vm673_vm13 = vmor %vm671_vm12, %vm672_vm11  ;;  %vm981_vm11 = vcmask 523264  }
 0xc09   :  { %v668_v34 = vsub.f32 1.0, %v667_v10  ;;  %v895_v10 = vrot.slane %v2404_v27, 2 }
 0xc0b   :  { %v669_v17 = vmul.f32 %v1942_v33, %v668_v34  ;;  %v901_v34 = vrot.slane %v2389_v51, 2 }
 0xc0d   :  { %v670_v36 = vadd.f32 %v1942_v33, %v669_v17 }
 0xc0f   :  { %v674_v46 = vsel %vm673_vm13, %v1942_v33, %v670_v36 }
 0xc10   :  { %v679_v40 = vsel %vm676_vm14, %v678_v38, %v674_v46 }
 0xc11   :  { %v682_v42 = vmul.f32 %v679_v40, %v602_v24 }
 0xc6e   :  { %v685_v39 = vpop.permute.xlu0 %684 }
 0xc6f   :  { %v687_v41 = vmul.f32 %v685_v39, %v679_v40 }
 0xc71   :  { %689 = vrot.lane.b32.xlu1 %v687_v41, %s2134_s22 }
 0xce3   :  { %v690_v44 = vpop.permute.xlu1 %689 }
 0xce4   :  { %v692_v45 = vadd.f32 %v690_v44, %v682_v42 }
 0xce6   :  { %1943 = vtanh.f32 %v692_v45 }
 0xcec   :  { %v1944_v49 = vpop.eup %1943 }
 0xced   :  { %695 = vrot.lane.b32.xlu2 %v1944_v49, %s2133_s3 }
 0xd47   :  { %v696_v50 = vpop.permute.xlu2 %695 }
 0xd48   :  { %v2419_v56 = vmul.f32 %v696_v50, %v679_v40  ;;  %v907_v50 = vrot.slane %v2366_v28, 2  ;;  %v961_v28 = vld [vmem:[#allocation5 + $0x50] sm:$0xff] }
 0xd4a   :  { %700 = vrot.lane.b32.xlu0 %v2419_v56, %s2134_s22  ;;  %v889_v49 = vrot.slane %v2419_v56, 2  ;;  %v963_v56 = vld [vmem:[#allocation5 + $0x60] sm:$0xff] }
 0xdbc   :  { %v2423_v57 = vpop.permute.xlu0 %700 }
 0xdbd   :  { %1854 = vmatmul.msk.f32.vlgmr.msrb.gmra.mxu0 %vm164_vm7, %v2423_v57  ;;  %1855 = vmatmul.msk.f32.vlgmr.msrb.gmra.mxu1 %vm164_vm7, %v2423_v57 }
 0xe3a   :  { %v721_v58 = vpop.f32.mrf.mxu0  ;;  %v741_v59 = vpop.f32.mrf.mxu1 }
 0xe3b   :  { %v747_v60 = vsel %vm211_vm2, %v721_v58, %v741_v59 }
 0xe3c   :  { %v748_v61 = vadd.f32 %v747_v60, %v2302_v47 }
 0xe3e   :  { %1945 = vtanh.f32 %v748_v61  ;;  %v1856_v63 = vmul.f32 -1.442695, %v748_v61 }
 0xe40   :  { %1947 = vpow2.f32 %v1856_v63  ;;  %v965_v63 = vld [vmem:[#allocation5 + $0x70] sm:$0xff] }
 0xe41   :  { %996 = vmatpush.msra.mxu0 %v965_v63 }
 0xe43   :  { %997 = vmatpush.msra.mxu0 %v963_v56 }
 0xe44   :  { %v1946_v62 = vpop.eup %1945 }
 0xe45   :  { %771 = vrot.lane.b32.xlu1 %v1946_v62, %s2133_s3  ;;  %v913_v62 = vrot.slane %v2343_v54, 2  ;;  %998 = vmatpush.msra.mxu0 %v961_v28 }
 0xe46   :  { %v1948_v0 = vpop.eup %1947 }
 0xe47   :  { %v752_v2 = vadd.f32 1.0, %v1948_v0  ;;  %v966_v0 = vld [vmem:[#allocation5 + $0x78] sm:$0xff] }
 0xe48   :  { %1019 = vmatpush.msra.mxu1 %v966_v0 }
 0xe49   :  { %1949 = vrcp.f32 %v752_v2  ;;  %v764_v35 = vand.u32 2147483648, %v752_v2  ;;  %vm758_vm1 = vweird.f32 %v752_v2  ;;  %v762_v43 = vand.u32 2147483647, %v752_v2 }
 0xe4b   :  { %v765_v13 = vor.u32 1.1754944e-38, %v764_v35  ;;  %vm763_vm4 = vcmp.eq.f32.partialorder %v762_v43, 8.507059e+37 }
 0xe4f   :  { %v1950_v3 = vpop.eup %1949 }
 0xe50   :  { %v754_v5 = vmul.f32 %v1950_v3, %v752_v2  ;;  %vm759_vm15 = vweird.f32 %v1950_v3  ;;  %v964_v2 = vld [vmem:[#allocation5 + $0x68] sm:$0xff] }
 0xe51   :  { %vm760_vm3 = vmor %vm758_vm1, %vm759_vm15  ;;  %1020 = vmatpush.msra.mxu1 %v964_v2 }
 0xe52   :  { %v755_v6 = vsub.f32 1.0, %v754_v5  ;;  %v959_v5 = vld [vmem:[#allocation5 + $0x40] sm:$0xff] }
 0xe53   :  { %999 = vmatpush.msra.mxu0 %v959_v5 }
 0xe54   :  { %v756_v8 = vmul.f32 %v1950_v3, %v755_v6  ;;  %v960_v6 = vld [vmem:[#allocation5 + $0x48] sm:$0xff] }
 0xe56   :  { %v757_v11 = vadd.f32 %v1950_v3, %v756_v8  ;;  %v957_v8 = vld [vmem:[#allocation5 + $0x30] sm:$0xff] }
 0xe57   :  { %1000 = vmatpush.msra.mxu0 %v957_v8 }
 0xe58   :  { %v761_v47 = vsel %vm760_vm3, %v1950_v3, %v757_v11  ;;  %v962_v3 = vld [vmem:[#allocation5 + $0x58] sm:$0xff] }
 0xe59   :  { %v766_v19 = vsel %vm763_vm4, %v765_v13, %v761_v47  ;;  %1021 = vmatpush.msra.mxu1 %v962_v3  ;;  %v958_v11 = vld [vmem:[#allocation5 + $0x38] sm:$0xff]  ;;  %v921_v47 = vrot.slane %v2321_v21, 2  ;;  %v955_v13 = vld [vmem:[#allocation5 + $0x20] sm:$0xff]  ;;  %v952_v21 = vld [vmem:[#allocation5 + $0x8] sm:$0xff] }
 0xe5a   :  { %v769_v23 = vmul.f32 %v766_v19, %v692_v45  ;;  %1001 = vmatpush.msra.mxu0 %v955_v13 }
 0xe5b   :  { %1022 = vmatpush.msra.mxu1 %v960_v6 }
 0xe5d   :  { %1023 = vmatpush.msra.mxu1 %v958_v11 }
 0xeb7   :  { %v772_v18 = vpop.permute.xlu1 %771 }
 0xeb8   :  { %v774_v20 = vmul.f32 %v772_v18, %v766_v19  ;;  %v956_v18 = vld [vmem:[#allocation5 + $0x28] sm:$0xff] }
 0xeb9   :  { %1024 = vmatpush.msra.mxu1 %v956_v18 }
 0xeba   :  { %776 = vrot.lane.b32.xlu2 %v774_v20, %s2134_s22  ;;  %v954_v20 = vld [vmem:[#allocation5 + $0x18] sm:$0xff] }
 0xebb   :  { %1025 = vmatpush.msra.mxu1 %v954_v20 }
 0xebd   :  { %1026 = vmatpush.msra.mxu1 %v952_v21 }
 0xf14   :  { %v777_v24 = vpop.permute.xlu2 %776 }
 0xf15   :  { %v779_v25 = vadd.f32 %v777_v24, %v769_v23  ;;  %v2461_v23 = vld [vmem:[#allocation7 + $0x30] sm:$0xff]  ;;  %v2463_v24 = vld [vmem:[#allocation7 + $0x38] sm:$0xff] }
 0xf16   :  { %1046 = vmatpush.msra.mxu2 %v2461_v23  ;;  %1066 = vmatpush.msra.mxu3 %v2463_v24 }
 0xf17   :  { %1951 = vtanh.f32 %v779_v25  ;;  %1331 = vmatpush.msrb.mxu1 %v2463_v24 }
 0xf1d   :  { %v1952_v26 = vpop.eup %1951 }
 0xf1e   :  { %782 = vrot.lane.b32.xlu0 %v1952_v26, %s2133_s3  ;;  %v2467_v26 = vld [vmem:[#allocation7 + $0x20] sm:$0xff] }
 0xf1f   :  { %1047 = vmatpush.msra.mxu2 %v2467_v26 }
 0xf90   :  { %v783_v31 = vpop.permute.xlu0 %782 }
 0xf91   :  { %v785_v32 = vmul.f32 %v783_v31, %v766_v19  ;;  %v953_v19 = vld [vmem:[#allocation5 + $0x10] sm:$0xff]  ;;  %v2469_v31 = vld [vmem:[#allocation7 + $0x28] sm:$0xff] }
 0xf92   :  { %1002 = vmatpush.msra.mxu0 %v953_v19  ;;  %1067 = vmatpush.msra.mxu3 %v2469_v31 }
 0xf93   :  { %787 = vrot.lane.b32.xlu1 %v785_v32, %s2134_s22  ;;  %v883_v33 = vrot.slane %v785_v32, 2  ;;  %v2471_v32 = vld [vmem:[#allocation7 + $0x10] sm:$0xff]  ;;  %1332 = vmatpush.msrb.mxu1 %v2469_v31 }
 0xf94   :  { %1048 = vmatpush.msra.mxu2 %v2471_v32 }
0x1005   :  { %v2435_v1 = vpop.permute.xlu1 %787 }
0x1006   :  { %1857 = vmatmul.msk.f32.vlgmr.msrb.gmra.mxu2 %vm164_vm7, %v2435_v1  ;;  %1858 = vmatmul.msk.f32.vlgmr.msrb.gmra.mxu3 %vm164_vm7, %v2435_v1 }
0x1089   :  { %v808_v12 = vpop.f32.mrf.mxu2  ;;  %v828_v4 = vpop.f32.mrf.mxu3 }
0x108a   :  { %v836_v15 = vsel %vm211_vm2, %v808_v12, %v828_v4  ;;  %v2475_v12 = vld [vmem:[#allocation7 + $0x18] sm:$0xff]  ;;  %v2483_v4 = vld [vmem:[#allocation7] sm:$0xff] }
0x108b   :  { %v837_v7 = vadd.f32 %v836_v15, %v2305_v48  ;;  %1068 = vmatpush.msra.mxu3 %v2475_v12  ;;  %v2485_v15 = vld [vmem:[#allocation7 + $0x8] sm:$0xff]  ;;  %1049 = vmatpush.msra.mxu2 %v2483_v4 }
0x108c   :  { %1050 = vmatmul.f32.vlgmr.msra.gmra.mxu2 %v2132_v14  ;;  %1333 = vmatpush.msrb.mxu1 %v2475_v12 }
0x108d   :  { %1953 = vtanh.f32 %v837_v7  ;;  %v1859_v17 = vmul.f32 -1.442695, %v837_v7  ;;  %1069 = vmatpush.msra.mxu3 %v2485_v15  ;;  %1134 = vmatpush.msrb.mxu2 %v2461_v23 }
0x108e   :  { %1070 = vmatmul.f32.vlgmr.msra.gmra.mxu3 %v2132_v14  ;;  %1334 = vmatpush.msrb.mxu1 %v2485_v15 }
0x108f   :  { %1955 = vpow2.f32 %v1859_v17  ;;  %1154 = vmatpush.msrb.mxu3 %v2463_v24  ;;  %1135 = vmatpush.msrb.mxu2 %v2467_v26 }
0x1091   :  { %1155 = vmatpush.msrb.mxu3 %v2469_v31  ;;  %1136 = vmatpush.msrb.mxu2 %v2471_v32 }
0x1093   :  { %v1954_v16 = vpop.eup %1953  ;;  %1156 = vmatpush.msrb.mxu3 %v2475_v12  ;;  %1137 = vmatpush.msrb.mxu2 %v2483_v4 }
0x1094   :  { %860 = vrot.lane.b32.xlu2 %v1954_v16, %s2133_s3 }
0x1095   :  { %v1956_v36 = vpop.eup %1955  ;;  %1157 = vmatpush.msrb.mxu3 %v2485_v15  ;;  %1224 = vmatpush.msra.mxu2 %v2461_v23 }
0x1096   :  { %v841_v37 = vadd.f32 1.0, %v1956_v36 }
0x1097   :  { %1244 = vmatpush.msra.mxu3 %v2463_v24  ;;  %1225 = vmatpush.msra.mxu2 %v2467_v26 }
0x1098   :  { %1957 = vrcp.f32 %v841_v37  ;;  %v853_v40 = vand.u32 2147483648, %v841_v37  ;;  %vm847_vm6 = vweird.f32 %v841_v37  ;;  %v851_v27 = vand.u32 2147483647, %v841_v37 }
0x1099   :  { %1245 = vmatpush.msra.mxu3 %v2469_v31  ;;  %1226 = vmatpush.msra.mxu2 %v2471_v32 }
0x109a   :  { %v854_v42 = vor.u32 1.1754944e-38, %v853_v40  ;;  %vm852_vm9 = vcmp.eq.f32.partialorder %v851_v27, 8.507059e+37 }
0x109b   :  { %1246 = vmatpush.msra.mxu3 %v2475_v12  ;;  %1227 = vmatpush.msra.mxu2 %v2483_v4 }
0x109c   :  { %884 = vrot.lane.b32.xlu2 %v883_v33, %s2133_s3 }
0x109d   :  { %1247 = vmatpush.msra.mxu3 %v2485_v15 }
0x109e   :  { %v1958_v48 = vpop.eup %1957 }
0x109f   :  { %v843_v52 = vmul.f32 %v1958_v48, %v841_v37  ;;  %vm848_vm5 = vweird.f32 %v1958_v48 }
0x10a0   :  { %vm849_vm8 = vmor %vm847_vm6, %vm848_vm5 }
0x10a1   :  { %v844_v46 = vsub.f32 1.0, %v843_v52 }
0x10a3   :  { %v845_v38 = vmul.f32 %v1958_v48, %v844_v46 }
0x10a4   :  { %896 = vrot.lane.b32.xlu2 %v895_v10, %s2133_s3 }
0x10a5   :  { %v846_v39 = vadd.f32 %v1958_v48, %v845_v38 }
0x10a7   :  { %v850_v41 = vsel %vm849_vm8, %v1958_v48, %v846_v39 }
0x10a8   :  { %v855_v44 = vsel %vm852_vm9, %v854_v42, %v850_v41 }
0x10a9   :  { %v858_v58 = vmul.f32 %v855_v44, %v779_v25  ;;  %v951_v25 = vld [vmem:[#allocation5] sm:$0xff] }
0x10aa   :  { %1003 = vmatpush.msra.mxu0 %v951_v25 }
0x10ac   :  { %902 = vrot.lane.b32.xlu2 %v901_v34, %s2133_s3  ;;  %1311 = vmatpush.msrb.mxu0 %v2461_v23 }
0x10ae   :  { %1312 = vmatpush.msrb.mxu0 %v2467_v26 }
0x10b0   :  { %1313 = vmatpush.msrb.mxu0 %v2471_v32 }
0x10b2   :  { %1314 = vmatpush.msrb.mxu0 %v2483_v4 }
0x10ee   :  { %v861_v51 = vpop.permute.xlu2 %860 }
0x10ef   :  { %v863_v45 = vmul.f32 %v861_v51, %v855_v44 }
0x10f1   :  { %865 = vrot.lane.b32.xlu0 %v863_v45, %s2134_s22 }
0x10f6   :  { %v885_v14 = vpop.permute.xlu2 %884 }
0x10f7   :  { %v887_v10 = vsel %vm164_vm7, %v2347_v55, %v885_v14 }
0x10f8   :  { %v927_v36 = vrot.slane %v887_v10, 6 }
0x10f9   :  { %890 = vrot.lane.b32.xlu0 %v889_v49, %s2133_s3 }
0x10fe   :  { %v897_v33 = vpop.permute.xlu2 %896 }
0x10ff   :  { %v899_v17 = vsel %vm164_vm7, %v2393_v53, %v897_v33 }
0x1100   :  { %v933_v38 = vrot.slane %v899_v17, 2 }
0x1101   :  { %908 = vrot.lane.b32.xlu0 %v907_v50, %s2133_s3 }
0x110f   :  { %v1051_v0 = vpop.f32.mrf.mxu2 }
0x1111   :  { %v1071_v56 = vpop.f32.mrf.mxu3 }
0x1112   :  { %v1078_v3 = vsel %vm211_vm2, %v1051_v0, %v1071_v56 }
0x1163   :  { %v866_v59 = vpop.permute.xlu0 %865 }
0x1164   :  { %v868_v60 = vadd.f32 %v866_v59, %v858_v58 }
0x1166   :  { %1959 = vtanh.f32 %v868_v60 }
0x116b   :  { %v891_v7 = vpop.permute.xlu0 %890 }
0x116c   :  { %v1960_v61 = vpop.eup %1959  ;;  %v893_v34 = vsel %vm164_vm7, %v2370_v29, %v891_v7 }
0x116d   :  { %871 = vrot.lane.b32.xlu1 %v1960_v61, %s2133_s3  ;;  %v930_v52 = vrot.slane %v893_v34, 4 }
0x1173   :  { %v909_v37 = vpop.permute.xlu0 %908 }
0x1174   :  { %v911_v55 = vsel %vm164_vm7, %v2423_v57, %v909_v37 }
0x1175   :  { %914 = vrot.lane.b32.xlu1 %v913_v62, %s2133_s3  ;;  %v936_v27 = vrot.slane %v911_v55, 6 }
0x11df   :  { %v872_v54 = vpop.permute.xlu1 %871 }
0x11e0   :  { %v874_v35 = vmul.f32 %v872_v54, %v855_v44 }
0x11e2   :  { %v877_v43 = vrot.slane %v874_v35, 2  ;;  %918 = vrot.lane.b32.xlu0 %v874_v35, %s2134_s22 }
0x11e4   :  { %878 = vrot.lane.b32.xlu1 %v877_v43, %s2133_s3 }
0x11e7   :  { %v915_v16 = vpop.permute.xlu1 %914 }
0x11e8   :  { %v917_v53 = vsel %vm164_vm7, %v2435_v1, %v915_v16 }
0x11e9   :  { %v939_v41 = vrot.slane %v917_v53, 4 }
0x11ec   :  { %922 = vrot.lane.b32.xlu1 %v921_v47, %s2133_s3 }
0x1254   :  { %v919_v42 = vpop.permute.xlu0 %918 }
0x1256   :  { %v879_v48 = vpop.permute.xlu1 %878 }
0x1257   :  { %v881_v46 = vsel %vm164_vm7, %v2325_v22, %v879_v48  ;;  %v903_v22 = vpop.permute.xlu2 %902 }
0x1258   :  { %v944_v39 = vsel %vm211_vm2, %v881_v46, %v927_v36  ;;  %v905_v1 = vsel %vm164_vm7, %v2408_v30, %v903_v22  ;;  %v975_v30 = vld [vmem:[%s2731_s6] sm:$0x3] }
0x1259   :  { %v945_v29 = vsel %vm111_vm0, %v944_v39, %v930_v52  ;;  %v948_v45 = vsel %vm211_vm2, %v905_v1, %v936_v27  ;;  %v978_v58 = vperm.slane %v975_v30, 1  ;;  %v977_v61 = vperm.slane %v975_v30, 0 }
0x125a   :  { %v947_v40 = vsel %vm946_vm10, %v945_v29, %v933_v38  ;;  %v949_v49 = vsel %vm111_vm0, %v948_v45, %v939_v41 }
0x125b   :  { %1860 = vmatmul.msk.f32.vlgmr.msra.gmra.mxu0 %vm981_vm11, %v947_v40  ;;  %1862 = vmatmul.msk.f32.vlgmr.msra.gmra.mxu1 %vm981_vm11, %v947_v40 }
0x125c   :  { %1488 = vmatpush.msra.mxu0 %v2461_v23  ;;  %1508 = vmatpush.msra.mxu1 %v2463_v24 }
0x125e   :  { %v923_v57 = vpop.permute.xlu1 %922  ;;  %1489 = vmatpush.msra.mxu0 %v2467_v26  ;;  %1509 = vmatpush.msra.mxu1 %v2469_v31 }
0x125f   :  { %v925_v51 = vsel %vm164_vm7, %v919_v42, %v923_v57 }
0x1260   :  { %v942_v44 = vrot.slane %v925_v51, 2  ;;  %1490 = vmatpush.msra.mxu0 %v2471_v32  ;;  %1510 = vmatpush.msra.mxu1 %v2475_v12 }
0x1262   :  { %v950_v50 = vsel %vm946_vm10, %v949_v49, %v942_v44  ;;  %1491 = vmatpush.msra.mxu0 %v2483_v4  ;;  %1511 = vmatpush.msra.mxu1 %v2485_v15 }
0x1263   :  { %1861 = vmatmul.msk.f32.gmra.mxu0 %vm981_vm11, %v950_v50  ;;  %1863 = vmatmul.msk.f32.gmra.mxu1 %vm981_vm11, %v950_v50 }
0x12d8   :  { %v1005_v59 = vpop.f32.mrf.mxu0  ;;  %v1028_v60 = vpop.f32.mrf.mxu1 }
0x12d9   :  { %v1029_v62 = vadd.f32 %v1028_v60, %v978_v58  ;;  %v1006_v63 = vadd.f32 %v1005_v59, %v977_v61 }
0x12db   :  { %v1163_v8 = vrot.slane %v1006_v63, 2  ;;  %v1252_v11 = vrot.slane %v1006_v63, 4  ;;  %v1339_v54 = vrot.slane %v1006_v63, 6  ;;  %v1429_v35 = vrot.slane %v1029_v62, 4 }
0x12dc   :  { %v1519_v43 = vrot.slane %v1029_v62, 2  ;;  %v1695_v47 = vrot.slane %v1029_v62, 6 }
0x12e0   :  { %v1008_v2 = vpop.f32.mrf.mxu0  ;;  %v1031_v28 = vpop.f32.mrf.mxu1 }
0x12e1   :  { %v1009_v5 = vadd.f32 %v1008_v2, %v977_v61  ;;  %v1032_v6 = vadd.f32 %v1031_v28, %v978_v58 }
0x12e3   :  { %v1075_v13 = vrot.slane %v1032_v6, 4  ;;  %v1165_v18 = vrot.slane %v1032_v6, 2  ;;  %v2549_v19 = vsel %vm211_vm2, %v1252_v11, %v1032_v6  ;;  %v1341_v20 = vrot.slane %v1032_v6, 6 }
0x12e4   :  { %v2552_v25 = vsel %vm211_vm2, %v1009_v5, %v1429_v35  ;;  %v1517_v21 = vrot.slane %v1009_v5, 2  ;;  %v1606_v14 = vrot.slane %v1009_v5, 4  ;;  %v1693_v7 = vrot.slane %v1009_v5, 6 }
0x12e5   :  { %v1077_v16 = vsel %vm211_vm2, %v1006_v63, %v1075_v13  ;;  %v1167_v33 = vsel %vm211_vm2, %v1163_v8, %v1165_v18  ;;  %v2557_v10 = vsel %vm211_vm2, %v1339_v54, %v1341_v20 }
0x12e6   :  { %v1079_v34 = vadd.f32 %v1078_v3, %v1077_v16  ;;  %v2560_v17 = vsel %vm211_vm2, %v1517_v21, %v1519_v43  ;;  %v2563_v36 = vsel %vm211_vm2, %v1606_v14, %v1029_v62  ;;  %v2566_v37 = vsel %vm211_vm2, %v1693_v7, %v1695_v47 }
0x12e8   :  { %1961 = vtanh.f32 %v1079_v34  ;;  %v1864_v52 = vmul.f32 -1.442695, %v1079_v34 }
0x12ea   :  { %1963 = vpow2.f32 %v1864_v52 }
0x12ee   :  { %v1962_v48 = vpop.eup %1961 }
0x12ef   :  { %1102 = vrot.lane.b32.xlu2 %v1962_v48, %s2133_s3 }
0x12f0   :  { %v1964_v46 = vpop.eup %1963 }
0x12f1   :  { %v1083_v38 = vadd.f32 1.0, %v1964_v46 }
0x12f3   :  { %1965 = vrcp.f32 %v1083_v38  ;;  %v1095_v22 = vand.u32 2147483648, %v1083_v38  ;;  %vm1089_vm13 = vweird.f32 %v1083_v38  ;;  %v1093_v27 = vand.u32 2147483647, %v1083_v38 }
0x12f5   :  { %v1096_v42 = vor.u32 1.1754944e-38, %v1095_v22  ;;  %vm1094_vm15 = vcmp.eq.f32.partialorder %v1093_v27, 8.507059e+37 }
0x12f9   :  { %v1966_v39 = vpop.eup %1965 }
0x12fa   :  { %v1085_v55 = vmul.f32 %v1966_v39, %v1083_v38  ;;  %vm1090_vm12 = vweird.f32 %v1966_v39 }
0x12fb   :  { %vm1091_vm14 = vmor %vm1089_vm13, %vm1090_vm12 }
0x12fc   :  { %v1086_v29 = vsub.f32 1.0, %v1085_v55 }
0x12fe   :  { %v1087_v53 = vmul.f32 %v1966_v39, %v1086_v29 }
0x1300   :  { %v1088_v40 = vadd.f32 %v1966_v39, %v1087_v53 }
0x1302   :  { %v1092_v41 = vsel %vm1091_vm14, %v1966_v39, %v1088_v40 }
0x1303   :  { %v1097_v1 = vsel %vm1094_vm15, %v1096_v42, %v1092_v41 }
0x1304   :  { %v1100_v44 = vmul.f32 %v1097_v1, %v2317_v9 }
0x1349   :  { %v1103_v57 = vpop.permute.xlu2 %1102 }
0x134a   :  { %v1105_v51 = vmul.f32 %v1103_v57, %v1097_v1 }
0x134c   :  { %1107 = vrot.lane.b32.xlu0 %v1105_v51, %s2134_s22 }
0x13be   :  { %v1108_v45 = vpop.permute.xlu0 %1107 }
0x13bf   :  { %v1110_v49 = vadd.f32 %v1108_v45, %v1100_v44 }
0x13c1   :  { %1967 = vtanh.f32 %v1110_v49 }
0x13c7   :  { %v1968_v50 = vpop.eup %1967 }
0x13c8   :  { %1113 = vrot.lane.b32.xlu1 %v1968_v50, %s2133_s3 }
0x143a   :  { %v1114_v30 = vpop.permute.xlu1 %1113 }
0x143b   :  { %v2572_v58 = vmul.f32 %v1114_v30, %v1097_v1 }
0x143d   :  { %1118 = vrot.lane.b32.xlu2 %v2572_v58, %s2134_s22 }
0x1497   :  { %v1119_v59 = vpop.permute.xlu2 %1118 }
0x1498   :  { %1865 = vmatmul.msk.f32.vlgmr.msrb.gmra.mxu2 %vm164_vm7, %v1119_v59  ;;  %1866 = vmatmul.msk.f32.vlgmr.msrb.gmra.mxu3 %vm164_vm7, %v1119_v59 }
0x1499   :  { %1400 = vmatpush.msrb.mxu2 %v2461_v23  ;;  %1420 = vmatpush.msrb.mxu3 %v2463_v24 }
0x149b   :  { %1401 = vmatpush.msrb.mxu2 %v2467_v26  ;;  %1421 = vmatpush.msrb.mxu3 %v2469_v31 }
0x149d   :  { %1402 = vmatpush.msrb.mxu2 %v2471_v32  ;;  %1422 = vmatpush.msrb.mxu3 %v2475_v12 }
0x149f   :  { %1403 = vmatpush.msrb.mxu2 %v2483_v4  ;;  %1423 = vmatpush.msrb.mxu3 %v2485_v15 }
0x151b   :  { %v1139_v9 = vpop.f32.mrf.mxu2  ;;  %v1159_v60 = vpop.f32.mrf.mxu3 }
0x151c   :  { %v1168_v61 = vsel %vm211_vm2, %v1139_v9, %v1159_v60 }
0x151d   :  { %v1169_v62 = vadd.f32 %v1168_v61, %v1167_v33 }
0x151f   :  { %1969 = vtanh.f32 %v1169_v62  ;;  %v1867_v0 = vmul.f32 -1.442695, %v1169_v62 }
0x1521   :  { %1971 = vpow2.f32 %v1867_v0 }
0x1525   :  { %v1970_v63 = vpop.eup %1969 }
0x1526   :  { %1192 = vrot.lane.b32.xlu0 %v1970_v63, %s2133_s3 }
0x1527   :  { %v1972_v56 = vpop.eup %1971 }
0x1528   :  { %v1173_v2 = vadd.f32 1.0, %v1972_v56 }
0x152a   :  { %1973 = vrcp.f32 %v1173_v2  ;;  %v1185_v11 = vand.u32 2147483648, %v1173_v2  ;;  %vm1179_vm3 = vweird.f32 %v1173_v2  ;;  %v1183_v54 = vand.u32 2147483647, %v1173_v2 }
0x152c   :  { %v1186_v43 = vor.u32 1.1754944e-38, %v1185_v11  ;;  %vm1184_vm5 = vcmp.eq.f32.partialorder %v1183_v54, 8.507059e+37 }
0x1530   :  { %v1974_v28 = vpop.eup %1973 }
0x1531   :  { %v1175_v3 = vmul.f32 %v1974_v28, %v1173_v2  ;;  %vm1180_vm1 = vweird.f32 %v1974_v28 }
0x1532   :  { %vm1181_vm4 = vmor %vm1179_vm3, %vm1180_vm1 }
0x1533   :  { %v1176_v5 = vsub.f32 1.0, %v1175_v3 }
0x1535   :  { %v1177_v6 = vmul.f32 %v1974_v28, %v1176_v5 }
0x1537   :  { %v1178_v8 = vadd.f32 %v1974_v28, %v1177_v6 }
0x1539   :  { %v1182_v35 = vsel %vm1181_vm4, %v1974_v28, %v1178_v8 }
0x153a   :  { %v1187_v13 = vsel %vm1184_vm5, %v1186_v43, %v1182_v35 }
0x153b   :  { %v1190_v20 = vmul.f32 %v1187_v13, %v1110_v49 }
0x1598   :  { %v1193_v47 = vpop.permute.xlu0 %1192 }
0x1599   :  { %v1195_v18 = vmul.f32 %v1193_v47, %v1187_v13 }
0x159b   :  { %1197 = vrot.lane.b32.xlu1 %v1195_v18, %s2134_s22 }
0x160d   :  { %v1198_v21 = vpop.permute.xlu1 %1197 }
0x160e   :  { %v1200_v14 = vadd.f32 %v1198_v21, %v1190_v20 }
0x1610   :  { %1975 = vtanh.f32 %v1200_v14 }
0x1616   :  { %v1976_v7 = vpop.eup %1975 }
0x1617   :  { %1203 = vrot.lane.b32.xlu2 %v1976_v7, %s2133_s3 }
0x1671   :  { %v1204_v16 = vpop.permute.xlu2 %1203 }
0x1672   :  { %v2590_v33 = vmul.f32 %v1204_v16, %v1187_v13 }
0x1674   :  { %1208 = vrot.lane.b32.xlu0 %v2590_v33, %s2134_s22 }
0x16e6   :  { %v1209_v34 = vpop.permute.xlu0 %1208 }
0x16e7   :  { %1868 = vmatmul.msk.f32.vlgmr.msra.gmra.mxu2 %vm164_vm7, %v1209_v34  ;;  %1869 = vmatmul.msk.f32.vlgmr.msra.gmra.mxu3 %vm164_vm7, %v1209_v34 }
0x16e8   :  { %1578 = vmatpush.msra.mxu2 %v2461_v23  ;;  %1598 = vmatpush.msra.mxu3 %v2463_v24 }
0x16ea   :  { %1579 = vmatpush.msra.mxu2 %v2467_v26  ;;  %1599 = vmatpush.msra.mxu3 %v2469_v31 }
0x16ec   :  { %1580 = vmatpush.msra.mxu2 %v2471_v32  ;;  %1600 = vmatpush.msra.mxu3 %v2475_v12 }
0x16ee   :  { %1581 = vmatpush.msra.mxu2 %v2483_v4  ;;  %1601 = vmatpush.msra.mxu3 %v2485_v15 }
0x176a   :  { %v1229_v48 = vpop.f32.mrf.mxu2  ;;  %v1249_v52 = vpop.f32.mrf.mxu3 }
0x176b   :  { %v1255_v46 = vsel %vm211_vm2, %v1229_v48, %v1249_v52 }
0x176c   :  { %v1256_v38 = vadd.f32 %v1255_v46, %v2549_v19 }
0x176e   :  { %1977 = vtanh.f32 %v1256_v38  ;;  %v1870_v55 = vmul.f32 -1.442695, %v1256_v38 }
0x1770   :  { %1979 = vpow2.f32 %v1870_v55 }
0x1774   :  { %v1978_v39 = vpop.eup %1977 }
0x1775   :  { %1279 = vrot.lane.b32.xlu1 %v1978_v39, %s2133_s3 }
0x1776   :  { %v1980_v29 = vpop.eup %1979 }
0x1777   :  { %v1260_v53 = vadd.f32 1.0, %v1980_v29 }
0x1779   :  { %1981 = vrcp.f32 %v1260_v53  ;;  %v1272_v57 = vand.u32 2147483648, %v1260_v53  ;;  %vm1266_vm8 = vweird.f32 %v1260_v53  ;;  %v1270_v1 = vand.u32 2147483647, %v1260_v53 }
0x177b   :  { %v1273_v51 = vor.u32 1.1754944e-38, %v1272_v57  ;;  %vm1271_vm12 = vcmp.eq.f32.partialorder %v1270_v1, 8.507059e+37 }
0x177f   :  { %v1982_v40 = vpop.eup %1981 }
0x1780   :  { %v1262_v22 = vmul.f32 %v1982_v40, %v1260_v53  ;;  %vm1267_vm6 = vweird.f32 %v1982_v40 }
0x1781   :  { %vm1268_vm9 = vmor %vm1266_vm8, %vm1267_vm6 }
0x1782   :  { %v1263_v27 = vsub.f32 1.0, %v1262_v22 }
0x1784   :  { %v1264_v41 = vmul.f32 %v1982_v40, %v1263_v27 }
0x1786   :  { %v1265_v42 = vadd.f32 %v1982_v40, %v1264_v41 }
0x1788   :  { %v1269_v19 = vsel %vm1268_vm9, %v1982_v40, %v1265_v42 }
0x1789   :  { %v1274_v45 = vsel %vm1271_vm12, %v1273_v51, %v1269_v19 }
0x178a   :  { %v1277_v50 = vmul.f32 %v1274_v45, %v1200_v14 }
0x17e7   :  { %v1280_v44 = vpop.permute.xlu1 %1279 }
0x17e8   :  { %v1282_v49 = vmul.f32 %v1280_v44, %v1274_v45 }
0x17ea   :  { %1284 = vrot.lane.b32.xlu2 %v1282_v49, %s2134_s22 }
0x1844   :  { %v1285_v30 = vpop.permute.xlu2 %1284 }
0x1845   :  { %v1287_v59 = vadd.f32 %v1285_v30, %v1277_v50 }
0x1847   :  { %1983 = vtanh.f32 %v1287_v59 }
0x184d   :  { %v1984_v9 = vpop.eup %1983 }
0x184e   :  { %1290 = vrot.lane.b32.xlu0 %v1984_v9, %s2133_s3 }
0x18c0   :  { %v1291_v60 = vpop.permute.xlu0 %1290 }
0x18c1   :  { %v2609_v61 = vmul.f32 %v1291_v60, %v1274_v45 }
0x18c3   :  { %1295 = vrot.lane.b32.xlu1 %v2609_v61, %s2134_s22 }
0x1935   :  { %v1296_v62 = vpop.permute.xlu1 %1295 }
0x1936   :  { %1871 = vmatmul.msk.f32.vlgmr.msrb.gmra.mxu0 %vm164_vm7, %v1296_v62  ;;  %1872 = vmatmul.msk.f32.vlgmr.msrb.gmra.mxu1 %vm164_vm7, %v1296_v62 }
0x1937   :  { %1665 = vmatpush.msrb.mxu0 %v2461_v23  ;;  %1685 = vmatpush.msrb.mxu1 %v2463_v24 }
0x1939   :  { %1666 = vmatpush.msrb.mxu0 %v2467_v26  ;;  %1686 = vmatpush.msrb.mxu1 %v2469_v31 }
0x193b   :  { %1667 = vmatpush.msrb.mxu0 %v2471_v32  ;;  %1687 = vmatpush.msrb.mxu1 %v2475_v12 }
0x193d   :  { %1668 = vmatpush.msrb.mxu0 %v2483_v4  ;;  %1688 = vmatpush.msrb.mxu1 %v2485_v15 }
0x19b3   :  { %v1316_v63 = vpop.f32.mrf.mxu0  ;;  %v1336_v0 = vpop.f32.mrf.mxu1 }
0x19b4   :  { %v1344_v56 = vsel %vm211_vm2, %v1316_v63, %v1336_v0 }
0x19b5   :  { %v1345_v23 = vadd.f32 %v1344_v56, %v2557_v10 }
0x19b7   :  { %1985 = vtanh.f32 %v1345_v23  ;;  %v1873_v26 = vmul.f32 -1.442695, %v1345_v23 }
0x19b9   :  { %1987 = vpow2.f32 %v1873_v26 }
0x19bd   :  { %v1986_v24 = vpop.eup %1985 }
0x19be   :  { %1368 = vrot.lane.b32.xlu2 %v1986_v24, %s2133_s3 }
0x19bf   :  { %v1988_v31 = vpop.eup %1987 }
0x19c0   :  { %v1349_v32 = vadd.f32 1.0, %v1988_v31 }
0x19c2   :  { %1989 = vrcp.f32 %v1349_v32  ;;  %v1361_v3 = vand.u32 2147483648, %v1349_v32  ;;  %vm1355_vm14 = vweird.f32 %v1349_v32  ;;  %v1359_v5 = vand.u32 2147483647, %v1349_v32 }
0x19c4   :  { %v1362_v6 = vor.u32 1.1754944e-38, %v1361_v3  ;;  %vm1360_vm1 = vcmp.eq.f32.partialorder %v1359_v5, 8.507059e+37 }
0x19c8   :  { %v1990_v12 = vpop.eup %1989 }
0x19c9   :  { %v1351_v2 = vmul.f32 %v1990_v12, %v1349_v32  ;;  %vm1356_vm13 = vweird.f32 %v1990_v12 }
0x19ca   :  { %vm1357_vm15 = vmor %vm1355_vm14, %vm1356_vm13 }
0x19cb   :  { %v1352_v4 = vsub.f32 1.0, %v1351_v2 }
0x19cd   :  { %v1353_v28 = vmul.f32 %v1990_v12, %v1352_v4 }
0x19cf   :  { %v1354_v15 = vadd.f32 %v1990_v12, %v1353_v28 }
0x19d1   :  { %v1358_v10 = vsel %vm1357_vm15, %v1990_v12, %v1354_v15 }
0x19d2   :  { %v1363_v11 = vsel %vm1360_vm1, %v1362_v6, %v1358_v10 }
0x19d3   :  { %v1366_v35 = vmul.f32 %v1363_v11, %v1287_v59 }
0x1a18   :  { %v1369_v8 = vpop.permute.xlu2 %1368 }
0x1a19   :  { %v1371_v54 = vmul.f32 %v1369_v8, %v1363_v11 }
0x1a1b   :  { %1373 = vrot.lane.b32.xlu0 %v1371_v54, %s2134_s22 }
0x1a8d   :  { %v1374_v43 = vpop.permute.xlu0 %1373 }
0x1a8e   :  { %v1376_v47 = vadd.f32 %v1374_v43, %v1366_v35 }
0x1a90   :  { %1991 = vtanh.f32 %v1376_v47 }
0x1a96   :  { %v1992_v13 = vpop.eup %1991 }
0x1a97   :  { %1379 = vrot.lane.b32.xlu1 %v1992_v13, %s2133_s3 }
0x1b09   :  { %v1380_v18 = vpop.permute.xlu1 %1379 }
0x1b0a   :  { %v2628_v20 = vmul.f32 %v1380_v18, %v1363_v11 }
0x1b0c   :  { %1384 = vrot.lane.b32.xlu2 %v2628_v20, %s2134_s22 }
0x1b66   :  { %v1385_v21 = vpop.permute.xlu2 %1384 }
0x1b67   :  { %1874 = vmatmul.msk.f32.vlgmr.msrb.gmra.mxu2 %vm164_vm7, %v1385_v21  ;;  %1875 = vmatmul.msk.f32.vlgmr.msrb.gmra.mxu3 %vm164_vm7, %v1385_v21 }
0x1bea   :  { %v1405_v14 = vpop.f32.mrf.mxu2  ;;  %v1425_v7 = vpop.f32.mrf.mxu3 }
0x1beb   :  { %v1432_v16 = vsel %vm211_vm2, %v1405_v14, %v1425_v7 }
0x1bec   :  { %v1433_v34 = vadd.f32 %v1432_v16, %v2552_v25 }
0x1bee   :  { %1993 = vtanh.f32 %v1433_v34  ;;  %v1876_v52 = vmul.f32 -1.442695, %v1433_v34 }
0x1bf0   :  { %1995 = vpow2.f32 %v1876_v52 }
0x1bf4   :  { %v1994_v48 = vpop.eup %1993 }
0x1bf5   :  { %1456 = vrot.lane.b32.xlu0 %v1994_v48, %s2133_s3 }
0x1bf6   :  { %v1996_v46 = vpop.eup %1995 }
0x1bf7   :  { %v1437_v38 = vadd.f32 1.0, %v1996_v46 }
0x1bf9   :  { %1997 = vrcp.f32 %v1437_v38  ;;  %v1449_v22 = vand.u32 2147483648, %v1437_v38  ;;  %vm1443_vm4 = vweird.f32 %v1437_v38  ;;  %v1447_v27 = vand.u32 2147483647, %v1437_v38 }
0x1bfb   :  { %v1450_v41 = vor.u32 1.1754944e-38, %v1449_v22  ;;  %vm1448_vm6 = vcmp.eq.f32.partialorder %v1447_v27, 8.507059e+37 }
0x1bff   :  { %v1998_v39 = vpop.eup %1997 }
0x1c00   :  { %v1439_v55 = vmul.f32 %v1998_v39, %v1437_v38  ;;  %vm1444_vm3 = vweird.f32 %v1998_v39 }
0x1c01   :  { %vm1445_vm5 = vmor %vm1443_vm4, %vm1444_vm3 }
0x1c02   :  { %v1440_v29 = vsub.f32 1.0, %v1439_v55 }
0x1c04   :  { %v1441_v53 = vmul.f32 %v1998_v39, %v1440_v29 }
0x1c06   :  { %v1442_v40 = vadd.f32 %v1998_v39, %v1441_v53 }
0x1c08   :  { %v1446_v25 = vsel %vm1445_vm5, %v1998_v39, %v1442_v40 }
0x1c09   :  { %v1451_v57 = vsel %vm1448_vm6, %v1450_v41, %v1446_v25 }
0x1c0a   :  { %v1454_v19 = vmul.f32 %v1451_v57, %v1376_v47 }
0x1c67   :  { %v1457_v42 = vpop.permute.xlu0 %1456 }
0x1c68   :  { %v1459_v1 = vmul.f32 %v1457_v42, %v1451_v57 }
0x1c6a   :  { %1461 = vrot.lane.b32.xlu1 %v1459_v1, %s2134_s22 }
0x1cdc   :  { %v1462_v51 = vpop.permute.xlu1 %1461 }
0x1cdd   :  { %v1464_v44 = vadd.f32 %v1462_v51, %v1454_v19 }
0x1cdf   :  { %1999 = vtanh.f32 %v1464_v44 }
0x1ce5   :  { %v2000_v45 = vpop.eup %1999 }
0x1ce6   :  { %1467 = vrot.lane.b32.xlu2 %v2000_v45, %s2133_s3 }
0x1d40   :  { %v1468_v49 = vpop.permute.xlu2 %1467 }
0x1d41   :  { %v1470_v50 = vmul.f32 %v1468_v49, %v1451_v57 }
0x1d43   :  { %1472 = vrot.lane.b32.xlu0 %v1470_v50, %s2134_s22 }
0x1db5   :  { %v2640_v30 = vpop.permute.xlu0 %1472 }
0x1db6   :  { %1877 = vmatmul.msk.f32.vlgmr.msra.gmra.mxu0 %vm164_vm7, %v2640_v30  ;;  %1878 = vmatmul.msk.f32.vlgmr.msra.gmra.mxu1 %vm164_vm7, %v2640_v30 }
0x1e33   :  { %v1493_v59 = vpop.f32.mrf.mxu0  ;;  %v1513_v9 = vpop.f32.mrf.mxu1 }
0x1e34   :  { %v1522_v60 = vsel %vm211_vm2, %v1493_v59, %v1513_v9  ;;  %v1744_v9 = vrot.slane %v2609_v61, 2 }
0x1e35   :  { %v1523_v62 = vadd.f32 %v1522_v60, %v2560_v17 }
0x1e37   :  { %2001 = vtanh.f32 %v1523_v62  ;;  %v1879_v0 = vmul.f32 -1.442695, %v1523_v62 }
0x1e39   :  { %2003 = vpow2.f32 %v1879_v0 }
0x1e3d   :  { %v2002_v63 = vpop.eup %2001 }
0x1e3e   :  { %1546 = vrot.lane.b32.xlu1 %v2002_v63, %s2133_s3 }
0x1e3f   :  { %v2004_v56 = vpop.eup %2003 }
0x1e40   :  { %v1527_v23 = vadd.f32 1.0, %v2004_v56 }
0x1e42   :  { %2005 = vrcp.f32 %v1527_v23  ;;  %v1539_v2 = vand.u32 2147483648, %v1527_v23  ;;  %vm1533_vm9 = vweird.f32 %v1527_v23  ;;  %v1537_v4 = vand.u32 2147483647, %v1527_v23 }
0x1e44   :  { %v1540_v28 = vor.u32 1.1754944e-38, %v1539_v2  ;;  %vm1538_vm13 = vcmp.eq.f32.partialorder %v1537_v4, 8.507059e+37 }
0x1e48   :  { %v2006_v24 = vpop.eup %2005 }
0x1e49   :  { %v1529_v26 = vmul.f32 %v2006_v24, %v1527_v23  ;;  %vm1534_vm8 = vweird.f32 %v2006_v24 }
0x1e4a   :  { %vm1535_vm12 = vmor %vm1533_vm9, %vm1534_vm8 }
0x1e4b   :  { %v1530_v31 = vsub.f32 1.0, %v1529_v26 }
0x1e4d   :  { %v1531_v32 = vmul.f32 %v2006_v24, %v1530_v31 }
0x1e4f   :  { %v1532_v12 = vadd.f32 %v2006_v24, %v1531_v32 }
0x1e51   :  { %v1536_v17 = vsel %vm1535_vm12, %v2006_v24, %v1532_v12 }
0x1e52   :  { %v1541_v3 = vsel %vm1538_vm13, %v1540_v28, %v1536_v17  ;;  %v1750_v17 = vrot.slane %v2590_v33, 2  ;;  %v1759_v28 = vrot.slane %v2572_v58, 2  ;;  %v1783_v33 = vld [vmem:[%s2732_s7 + $0x38] sm:$0xff]  ;;  %v1782_v58 = vld [vmem:[%s2732_s7 + $0x30] sm:$0xff] }
0x1e53   :  { %v1544_v10 = vmul.f32 %v1541_v3, %v1464_v44  ;;  %1800 = vmatpush.msrb.mxu2 %v1783_v33 }
0x1e55   :  { %1801 = vmatpush.msrb.mxu2 %v1782_v58 }
0x1eb0   :  { %v1547_v15 = vpop.permute.xlu1 %1546 }
0x1eb1   :  { %v1549_v5 = vmul.f32 %v1547_v15, %v1541_v3 }
0x1eb3   :  { %1551 = vrot.lane.b32.xlu2 %v1549_v5, %s2134_s22 }
0x1f0d   :  { %v1552_v6 = vpop.permute.xlu2 %1551 }
0x1f0e   :  { %v1554_v8 = vadd.f32 %v1552_v6, %v1544_v10  ;;  %v1738_v6 = vrot.slane %v2628_v20, 2  ;;  %v1780_v20 = vld [vmem:[%s2732_s7 + $0x20] sm:$0xff] }
0x1f10   :  { %2007 = vtanh.f32 %v1554_v8 }
0x1f16   :  { %v2008_v11 = vpop.eup %2007 }
0x1f17   :  { %1557 = vrot.lane.b32.xlu0 %v2008_v11, %s2133_s3  ;;  %v1779_v11 = vld [vmem:[%s2732_s7 + $0x18] sm:$0xff] }
0x1f89   :  { %v1558_v54 = vpop.permute.xlu0 %1557 }
0x1f8a   :  { %v1560_v35 = vmul.f32 %v1558_v54, %v1541_v3 }
0x1f8c   :  { %1562 = vrot.lane.b32.xlu1 %v1560_v35, %s2134_s22 }
0x1ffe   :  { %v2652_v43 = vpop.permute.xlu1 %1562 }
0x1fff   :  { %1880 = vmatmul.msk.f32.vlgmr.msra.gmra.mxu2 %vm164_vm7, %v2652_v43  ;;  %1881 = vmatmul.msk.f32.vlgmr.msra.gmra.mxu3 %vm164_vm7, %v2652_v43 }
0x2082   :  { %v1583_v47 = vpop.f32.mrf.mxu2  ;;  %v1603_v13 = vpop.f32.mrf.mxu3 }
0x2083   :  { %v1609_v18 = vsel %vm211_vm2, %v1583_v47, %v1603_v13  ;;  %v1778_v47 = vld [vmem:[%s2732_s7 + $0x10] sm:$0xff]  ;;  %v1777_v13 = vld [vmem:[%s2732_s7 + $0x8] sm:$0xff] }
0x2084   :  { %v1610_v21 = vadd.f32 %v1609_v18, %v2563_v36  ;;  %v1776_v18 = vld [vmem:[%s2732_s7] sm:$0xff] }
0x2086   :  { %2009 = vtanh.f32 %v1610_v21  ;;  %v1882_v7 = vmul.f32 -1.442695, %v1610_v21 }
0x2088   :  { %2011 = vpow2.f32 %v1882_v7 }
0x208c   :  { %v2010_v14 = vpop.eup %2009 }
0x208d   :  { %1633 = vrot.lane.b32.xlu2 %v2010_v14, %s2133_s3 }
0x208e   :  { %v2012_v16 = vpop.eup %2011 }
0x208f   :  { %v1614_v34 = vadd.f32 1.0, %v2012_v16 }
0x2091   :  { %2013 = vrcp.f32 %v1614_v34  ;;  %v1626_v55 = vand.u32 2147483648, %v1614_v34  ;;  %vm1620_vm15 = vweird.f32 %v1614_v34  ;;  %v1624_v29 = vand.u32 2147483647, %v1614_v34 }
0x2093   :  { %v1627_v53 = vor.u32 1.1754944e-38, %v1626_v55  ;;  %vm1625_vm3 = vcmp.eq.f32.partialorder %v1624_v29, 8.507059e+37 }
0x2097   :  { %v2014_v48 = vpop.eup %2013 }
0x2098   :  { %v1616_v52 = vmul.f32 %v2014_v48, %v1614_v34  ;;  %vm1621_vm14 = vweird.f32 %v2014_v48 }
0x2099   :  { %vm1622_vm1 = vmor %vm1620_vm15, %vm1621_vm14 }
0x209a   :  { %v1617_v46 = vsub.f32 1.0, %v1616_v52 }
0x209c   :  { %v1618_v38 = vmul.f32 %v2014_v48, %v1617_v46 }
0x209e   :  { %v1619_v39 = vadd.f32 %v2014_v48, %v1618_v38 }
0x20a0   :  { %v1623_v36 = vsel %vm1622_vm1, %v2014_v48, %v1619_v39 }
0x20a1   :  { %v1628_v22 = vsel %vm1625_vm3, %v1627_v53, %v1623_v36 }
0x20a2   :  { %v1631_v25 = vmul.f32 %v1628_v22, %v1554_v8  ;;  %v1781_v8 = vld [vmem:[%s2732_s7 + $0x28] sm:$0xff] }
0x20a3   :  { %1802 = vmatpush.msrb.mxu2 %v1781_v8 }
0x20a5   :  { %1803 = vmatpush.msrb.mxu2 %v1780_v20 }
0x20a7   :  { %1804 = vmatpush.msrb.mxu2 %v1779_v11 }
0x20a9   :  { %1805 = vmatpush.msrb.mxu2 %v1778_v47 }
0x20ab   :  { %1806 = vmatpush.msrb.mxu2 %v1777_v13 }
0x20ad   :  { %1807 = vmatpush.msrb.mxu2 %v1776_v18 }
0x20e7   :  { %v1634_v40 = vpop.permute.xlu2 %1633 }
0x20e8   :  { %v1636_v27 = vmul.f32 %v1634_v40, %v1628_v22 }
0x20ea   :  { %1638 = vrot.lane.b32.xlu0 %v1636_v27, %s2134_s22 }
0x215c   :  { %v1639_v41 = vpop.permute.xlu0 %1638 }
0x215d   :  { %v1641_v42 = vadd.f32 %v1639_v41, %v1631_v25 }
0x215f   :  { %2015 = vtanh.f32 %v1641_v42 }
0x2165   :  { %v2016_v57 = vpop.eup %2015 }
0x2166   :  { %1644 = vrot.lane.b32.xlu1 %v2016_v57, %s2133_s3 }
0x21d8   :  { %v1645_v1 = vpop.permute.xlu1 %1644 }
0x21d9   :  { %v1647_v19 = vmul.f32 %v1645_v1, %v1628_v22 }
0x21db   :  { %1649 = vrot.lane.b32.xlu2 %v1647_v19, %s2134_s22 }
0x2235   :  { %v2664_v51 = vpop.permute.xlu2 %1649 }
0x2236   :  { %1883 = vmatmul.msk.f32.vlgmr.msrb.gmra.mxu0 %vm164_vm7, %v2664_v51  ;;  %1884 = vmatmul.msk.f32.vlgmr.msrb.gmra.mxu1 %vm164_vm7, %v2664_v51 }
0x22b3   :  { %v1670_v44 = vpop.f32.mrf.mxu0  ;;  %v1690_v45 = vpop.f32.mrf.mxu1 }
0x22b4   :  { %v1698_v49 = vsel %vm211_vm2, %v1670_v44, %v1690_v45 }
0x22b5   :  { %v1699_v50 = vadd.f32 %v1698_v49, %v2566_v37 }
0x22b7   :  { %2017 = vtanh.f32 %v1699_v50  ;;  %v1885_v60 = vmul.f32 -1.442695, %v1699_v50 }
0x22b9   :  { %2019 = vpow2.f32 %v1885_v60 }
0x22bd   :  { %v2018_v59 = vpop.eup %2017 }
0x22be   :  { %1722 = vrot.lane.b32.xlu0 %v2018_v59, %s2133_s3 }
0x22bf   :  { %v2020_v62 = vpop.eup %2019 }
0x22c0   :  { %v1703_v63 = vadd.f32 1.0, %v2020_v62 }
0x22c2   :  { %2021 = vrcp.f32 %v1703_v63  ;;  %v1715_v37 = vand.u32 2147483648, %v1703_v63  ;;  %vm1709_vm5 = vweird.f32 %v1703_v63  ;;  %v1713_v31 = vand.u32 2147483647, %v1703_v63 }
0x22c4   :  { %v1716_v12 = vor.u32 1.1754944e-38, %v1715_v37  ;;  %vm1714_vm8 = vcmp.eq.f32.partialorder %v1713_v31, 8.507059e+37 }
0x22c6   :  { %1745 = vrot.lane.b32.xlu0 %v1744_v9, %s2133_s3 }
0x22c8   :  { %v2022_v0 = vpop.eup %2021 }
0x22c9   :  { %v1705_v56 = vmul.f32 %v2022_v0, %v1703_v63  ;;  %vm1710_vm4 = vweird.f32 %v2022_v0 }
0x22ca   :  { %vm1711_vm6 = vmor %vm1709_vm5, %vm1710_vm4 }
0x22cb   :  { %v1706_v23 = vsub.f32 1.0, %v1705_v56 }
0x22cd   :  { %v1707_v24 = vmul.f32 %v2022_v0, %v1706_v23 }
0x22cf   :  { %v1708_v26 = vadd.f32 %v2022_v0, %v1707_v24 }
0x22d1   :  { %v1712_v32 = vsel %vm1711_vm6, %v2022_v0, %v1708_v26 }
0x22d2   :  { %v1717_v2 = vsel %vm1714_vm8, %v1716_v12, %v1712_v32 }
0x22d3   :  { %v1720_v15 = vmul.f32 %v1717_v2, %v1641_v42 }
0x2330   :  { %v1723_v61 = vpop.permute.xlu0 %1722 }
0x2331   :  { %v1725_v4 = vmul.f32 %v1723_v61, %v1717_v2 }
0x2333   :  { %1727 = vrot.lane.b32.xlu1 %v1725_v4, %s2134_s22 }
0x2338   :  { %v1746_v14 = vpop.permute.xlu0 %1745 }
0x2339   :  { %v1748_v16 = vsel %vm164_vm7, %v2652_v43, %v1746_v14 }
0x233a   :  { %v1765_v48 = vrot.slane %v1748_v16, 6 }
0x233b   :  { %1751 = vrot.lane.b32.xlu1 %v1750_v17, %s2133_s3 }
0x2343   :  { %1760 = vrot.lane.b32.xlu1 %v1759_v28, %s2133_s3 }
0x23a5   :  { %v1728_v3 = vpop.permute.xlu1 %1727 }
0x23a6   :  { %v1730_v5 = vadd.f32 %v1728_v3, %v1720_v15 }
0x23a8   :  { %2023 = vtanh.f32 %v1730_v5 }
0x23ad   :  { %v1752_v21 = vpop.permute.xlu1 %1751 }
0x23ae   :  { %v2024_v10 = vpop.eup %2023  ;;  %v1754_v52 = vsel %vm164_vm7, %v2664_v51, %v1752_v21 }
0x23af   :  { %1733 = vrot.lane.b32.xlu2 %v2024_v10, %s2133_s3  ;;  %v1768_v55 = vrot.slane %v1754_v52, 4 }
0x23b5   :  { %v1761_v46 = vpop.permute.xlu1 %1760 }
0x23b7   :  { %1739 = vrot.lane.b32.xlu2 %v1738_v6, %s2133_s3 }
0x2409   :  { %v1734_v54 = vpop.permute.xlu2 %1733 }
0x240a   :  { %v1736_v35 = vmul.f32 %v1734_v54, %v1717_v2 }
0x240c   :  { %1756 = vrot.lane.b32.xlu0 %v1736_v35, %s2134_s22 }
0x2411   :  { %v1740_v7 = vpop.permute.xlu2 %1739 }
0x2412   :  { %v1742_v34 = vsel %vm164_vm7, %v2640_v30, %v1740_v7  ;;  %v1896_v30 = vld [vmem:[%s2733_s8] ss:$0 sm:$0xff] }
0x2413   :  { %v1773_v38 = vsel %vm211_vm2, %v1742_v34, %v1765_v48  ;;  %vm1812_vm2 = vcmask 74752  }
0x2414   :  { %v1774_v53 = vsel %vm111_vm0, %v1773_v38, %v1768_v55 }
0x247e   :  { %v1757_v39 = vpop.permute.xlu0 %1756 }
0x247f   :  { %v1763_v29 = vsel %vm164_vm7, %v1757_v39, %v1761_v46 }
0x2480   :  { %v1771_v36 = vrot.slane %v1763_v29, 2 }
0x2482   :  { %v1775_v40 = vsel %vm946_vm10, %v1774_v53, %v1771_v36 }
0x2483   :  { %v1789_v43 = vrot.slane %v1775_v40, 6 }
0x2485   :  { %1886 = vmatmul.msk.f32.vlgmr.msrb.gmra.mxu2 %vm981_vm11, %v1789_v43 }
0x2508   :  { %v1809_v22 = vpop.f32.mrf.mxu2 }
0x2509   :  { %v1810_v27 = vadd.f32 %v1896_v30, %v1809_v22 }
0x250b   :  { %1813 = vst.msk [vmem:[#allocation8] sm:$0x3] %vm1812_vm2, %v1810_v27 }
0x250c   :  { %1824 = dma.vmem_to_hbm [thread:$0]  %s1820_s18, 32, %s1822_s20, [#allocation4]  }
0x250d   :  { %2125 = dma.done.wait [#allocation4], 32  }
0x250e   :  { %2126 = vsyncadd [#allocation4], 4294967264 }
0x250f   :  { %1829 = vsyncpa [#allocation3], 1 }
0x2510   :  { %1830 = vsyncpa [#allocation6], 1 }
0x2511   :  { %1831 = vsyncpa [#allocation4], 1 }

</bundles_post_ra>
